<compile_context>
chip_gen: v5e
topology: v5e:2x2
jax: 0.10.0
libtpu: 0.0.40
codegen_flags: <defaults>
</compile_context>

<pallas_src>
import jax
import jax.numpy as jnp
from jax.experimental import pallas as pl
from jax.experimental.pallas import tpu as pltpu


def relu_conv1x1_kernel(x_ref, w_ref, o_ref):
    # x_ref: (rows, C_in) f32 | w_ref: (C_in, tco) f32 | o_ref: (rows, tco) f32
    x = jnp.maximum(x_ref[...], 0.0)  # ReLU on dense-lane vregs (VPU)
    o_ref[...] = jnp.dot(
        x, w_ref[...], preferred_element_type=jnp.float32
    ).astype(o_ref.dtype)


def relu_conv1x1(x_nchw, weight_oihw, *, tco=128):
    """x_nchw: (N, C_in, H, W) f32; weight_oihw: (C_out, C_in, 1, 1) f32 -> NCHW out."""
    N, C_in, H, W = x_nchw.shape
    C_out = weight_oihw.shape[0]
    rows = N * H * W

    # One-time layout plumbing on the wrapper side (~254 KB transpose of x at the
    # spec shape) — far cheaper than the lane waste the old orientation caused.
    x2 = jnp.transpose(x_nchw, (0, 2, 3, 1)).reshape(rows, C_in)      # (rows, C_in)
    w2 = jnp.transpose(weight_oihw.reshape(C_out, C_in), (1, 0))      # (C_in, C_out), f32

    tco = min(tco, C_out)
    grid = (pl.cdiv(C_out, tco),)

    flops = 2 * rows * C_in * C_out
    bytes_accessed = x2.size * 4 + w2.size * 4 + rows * C_out * 4

    out2 = pl.pallas_call(
        relu_conv1x1_kernel,
        out_shape=jax.ShapeDtypeStruct((rows, C_out), x_nchw.dtype),
        grid=grid,
        in_specs=[
            # Constant block index -> x is DMA'd into VMEM once and reused
            # across all C_out blocks.
            pl.BlockSpec((rows, C_in), lambda j: (0, 0)),
            # Weight tiled along C_out: 128-lane-aligned blocks, ragged tail
            # handled by the cdiv grid. Gives the pipeline something to overlap
            # and splits work across TCs on v7x.
            pl.BlockSpec((C_in, tco), lambda j: (0, j)),
        ],
        out_specs=pl.BlockSpec((rows, tco), lambda j: (0, j)),
        compiler_params=pltpu.CompilerParams(
            dimension_semantics=("parallel",),
        ),
        cost_estimate=pl.CostEstimate(
            flops=flops, transcendentals=0, bytes_accessed=bytes_accessed
        ),
    )(x2, w2)

    # Back to NCHW so the wrapper matches the PyTorch module's output layout.
    # (A real transpose, not a reshape — required after the orientation flip.)
    return out2.reshape(N, H, W, C_out).transpose(0, 3, 1, 2)


if __name__ == "__main__":
    key = jax.random.PRNGKey(0)
    k_x, k_w = jax.random.split(key)

    # Shapes implied by the module's forward pass.
    N, C_in, H, W = 1, 1296, 7, 7
    C_out = 192

    x = jax.random.normal(k_x, (N, C_in, H, W), dtype=jnp.float32)
    # Deterministic synthetic conv weight (kaiming-ish scale), no bias.
    w = jax.random.normal(k_w, (C_out, C_in, 1, 1), dtype=jnp.float32) * (
        1.0 / jnp.sqrt(C_in)
    )

    out = relu_conv1x1(x, w)
    jax.block_until_ready(out)

    # Plain-JAX f32 reference (ReLU + 1x1 conv, NCHW). Operands are no longer
    # explicitly downcast to bf16, so numerics are at least as tight as the
    # previous version; the tolerance only covers MXU default-precision passes.
    ref = jax.lax.conv_general_dilated(
        jnp.maximum(x, 0.0), w, (1, 1), "VALID",
        dimension_numbers=("NCHW", "OIHW", "NCHW"),
    )
    assert out.shape == (N, C_out, H, W), out.shape
    assert jnp.allclose(out, ref, atol=2e-2, rtol=2e-2), float(
        jnp.max(jnp.abs(out - ref))
    )

    print("KERNEL_OK")
</pallas_src>

<mosaic_0001>
module attributes {stable_mosaic.version = 11 : i64} {
  func.func @relu_conv1x1_kernel(%arg0: i32, %arg1: memref<49x1296xf32, #tpu.memory_space<vmem>>, %arg2: memref<1296x128xf32, #tpu.memory_space<vmem>>, %arg3: memref<49x128xf32, #tpu.memory_space<vmem>>) attributes {dimension_semantics = [#tpu.dimension_semantics<parallel>], iteration_bounds = array<i64: 2>, scalar_prefetch = 0 : i64, scratch_operands = 0 : i64, tpu.core_type = #tpu.core_type<tc>, window_params = [{pipeline_mode = #tpu.pipeline_mode<synchronous>, transform_indices = @transform_0, window_bounds = array<i64: 49, 1296>}, {transform_indices = @transform_1, window_bounds = array<i64: 1296, 128>}, {transform_indices = @transform_2, window_bounds = array<i64: 49, 128>}]} {
    %c0 = arith.constant 0 : index
    %c0_0 = arith.constant 0 : index
    %0 = vector.load %arg1[%c0, %c0_0] : memref<49x1296xf32, #tpu.memory_space<vmem>>, vector<49x1296xf32>
    %cst = arith.constant 0.000000e+00 : f32
    %1 = vector.broadcast %cst : f32 to vector<49x1296xf32>
    %2 = arith.maximumf %0, %1 : vector<49x1296xf32>
    %c0_1 = arith.constant 0 : index
    %c0_2 = arith.constant 0 : index
    %3 = vector.load %arg2[%c0_1, %c0_2] : memref<1296x128xf32, #tpu.memory_space<vmem>>, vector<1296x128xf32>
    %cst_3 = arith.constant dense<0.000000e+00> : vector<49x128xf32>
    %4 = tpu.matmul %2, %3, %cst_3 {dimension_numbers = #tpu.dot_dimension_numbers<[1], [0], [0], [1], [0, 0, 1, 1], [], []>} : vector<49x1296xf32>, vector<1296x128xf32>, vector<49x128xf32> -> vector<49x128xf32>
    %c0_4 = arith.constant 0 : index
    %c0_5 = arith.constant 0 : index
    %5 = vector.load %arg3[%c0_4, %c0_5] : memref<49x128xf32, #tpu.memory_space<vmem>>, vector<49x128xf32>
    tpu.vector_store %arg3[%c0_4, %c0_5], %4 {strides = array<i32>} : memref<49x128xf32, #tpu.memory_space<vmem>>, vector<49x128xf32>,
    return
  }
  func.func @transform_0(%arg0: i32) -> (i32, i32) {
    %c0_i32 = arith.constant 0 : i32
    %c0_i32_0 = arith.constant 0 : i32
    %c0_i32_1 = arith.constant 0 : i32
    return %c0_i32, %c0_i32_0 : i32, i32
  }
  func.func @transform_1(%arg0: i32) -> (i32, i32) {
    %c0_i32 = arith.constant 0 : i32
    %c0_i32_0 = arith.constant 0 : i32
    return %c0_i32, %arg0 : i32, i32
  }
  func.func @transform_2(%arg0: i32) -> (i32, i32) {
    %c0_i32 = arith.constant 0 : i32
    %c0_i32_0 = arith.constant 0 : i32
    return %c0_i32, %arg0 : i32, i32
  }
}

</mosaic_0001>

<bundles_post_ra>
// kernel: tpu_custom_call.1
= control target key start
LH: loop header
LB: loop body
LE: loop exit
PB: predicated region body
PF: predicated region fallthrough
CT: control target
= control target key end

     0   :  { %7 = vsyncpa [#allocation4], 0  ;;  %s2762_s0 = inlined_call_operand.vmem [shape: f32[49,1296], index: 0, kind: input, shape index: {}]   ;;  %s2763_s1 = inlined_call_operand.vmem [shape: f32[1296,192], index: 1, kind: input, shape index: {}]   ;;  %s2764_s2 = inlined_call_operand.hbm [shape: f32[49,192], index: 2, kind: output, shape index: {}]  }
   0x1   :  { %9 = vsyncpa [#allocation4 + $0x1], 0  ;;  %s1843_s9 = smov 0   ;;  %s1845_s10 = smov 0  }
   0x2   :  { %s1847_s11 = smov 0   ;;  %s1849_s12 = smov 0  }
   0x3 LB: > { %s1666_s13 = sadd.s32 4294967295, %s1823_s12   ;;  %s1667_s14 = sadd.s32 4294967294, %s1823_s12   ;;  %s1823_s12 = sphi %s1849_s12, %s2770_s12   ;;  %s1819_s11 = sphi %s1847_s11, %s2769_s11   ;;  %s1815_s10 = sphi %s1845_s10, %s2768_s10   ;;  %s1811_s9 = sphi %s1843_s9, %s2767_s9  }
   0x4   : > { %s1866_s15 = sadd.s32 1, %s1823_s12   ;;  %s43_s16 = sadd.s32 1, %s1819_s11 }
   0x5   : > { %s40_s17 = ssub.s32 %s1823_s12, %s1866_s15  ;;  %p50_p0 = scmp.ne.s32.totalorder %s1819_s11, %s1815_s10 }
   0x6   : > { %p41_p1 = scmp.eq.s32.totalorder %s40_s17, 0  ;;  %p51_p2 = scmp.eq.s32.totalorder %s1823_s12, 0 }
   0x7   : > { %p80_p3 = scmp.eq.s32.totalorder %s1666_s13, 1  ;;  %p85_p4 = scmp.ne.s32.totalorder %s1815_s10, %s1811_s9 }
   0x8   : > { %s1879_s18 = scalar_select %p41_p1, %s1819_s11, %s43_s16  }
   0x9   : > { %p52_p5 = por %p51_p2, %p50_p0  ;;  %p1881_p6 = por %p80_p3, %p50_p0 }
   0xa   : > { %p86_p7 = scmp.eq.s32.totalorder %s1667_s14, 1  ;;  %p1669_p9 = scmp.ge.s32.totalorder %s1823_s12, 2 }
   0xc   : > { %p1885_p8 = por %p86_p7, %p85_p4  ;;  %105 = sbr.rel (%p1669_p9) target bundleno = 183 (0xb7), region = 20 }
  0x11   : > { %108 = sbr.rel (!%p52_p5) target bundleno = 183 (0xb7), region = 24  ;;  %s110_s21 = sand.u32 (%p52_p5), 1, %s1819_s11  }
  0x12   : > { %s1670_s22 = sshll.u32 (%p52_p5), %s1823_s12, 3  ;;  %s1716_s23 = smul.u32 (%p52_p5), 1296, %s110_s21 }
  0x13   : > { %s1897_s26 = scalar_lea.vmem (%p52_p5), %s2763_s1, %s1670_s22 }
  0x14   : > { %v465_v0 = vld [vmem:[%s1897_s26] sm:$0xff] (%p52_p5)  ;;  %v467_v1 = vld [vmem:[%s1897_s26 + $0x10] sm:$0xff] (%p52_p5)  ;;  %s1902_s27 = scalar_lea.vmem (%p52_p5), [#allocation2], %s1716_s23 }
  0x15   : > { %v469_v2 = vld [vmem:[%s1897_s26 + $0x20] sm:$0xff] (%p52_p5)  ;;  %466 = vst [vmem:[%s1902_s27] sm:$0xff] (%p52_p5), %v465_v0  ;;  %v471_v3 = vld [vmem:[%s1897_s26 + $0x30] sm:$0xff] (%p52_p5) }
  0x16   : > { %468 = vst [vmem:[%s1902_s27 + $0x8] sm:$0xff] %v467_v1  ;;  %v473_v4 = vld [vmem:[%s1897_s26 + $0x40] sm:$0xff]  ;;  %v475_v5 = vld [vmem:[%s1897_s26 + $0x50] sm:$0xff] }
  0x17   : > { %470 = vst [vmem:[%s1902_s27 + $0x10] sm:$0xff] %v469_v2  ;;  %v477_v6 = vld [vmem:[%s1897_s26 + $0x60] sm:$0xff]  ;;  %v479_v7 = vld [vmem:[%s1897_s26 + $0x70] sm:$0xff] }
  0x18   : > { %472 = vst [vmem:[%s1902_s27 + $0x18] sm:$0xff] %v471_v3  ;;  %v481_v8 = vld [vmem:[%s1897_s26 + $0x80] sm:$0xff]  ;;  %v483_v9 = vld [vmem:[%s1897_s26 + $0x90] sm:$0xff] }
  0x19   : > { %474 = vst [vmem:[%s1902_s27 + $0x20] sm:$0xff] %v473_v4  ;;  %v485_v10 = vld [vmem:[%s1897_s26 + $0xa0] sm:$0xff]  ;;  %v487_v11 = vld [vmem:[%s1897_s26 + $0xb0] sm:$0xff] }
  0x1a   : > { %476 = vst [vmem:[%s1902_s27 + $0x28] sm:$0xff] %v475_v5  ;;  %v489_v12 = vld [vmem:[%s1897_s26 + $0xc0] sm:$0xff]  ;;  %v491_v13 = vld [vmem:[%s1897_s26 + $0xd0] sm:$0xff] }
  0x1b   : > { %478 = vst [vmem:[%s1902_s27 + $0x30] sm:$0xff] %v477_v6  ;;  %v493_v14 = vld [vmem:[%s1897_s26 + $0xe0] sm:$0xff]  ;;  %v495_v15 = vld [vmem:[%s1897_s26 + $0xf0] sm:$0xff] }
  0x1c   : > { %480 = vst [vmem:[%s1902_s27 + $0x38] sm:$0xff] %v479_v7  ;;  %v497_v16 = vld [vmem:[%s1897_s26 + $0x100] sm:$0xff]  ;;  %v499_v17 = vld [vmem:[%s1897_s26 + $0x110] sm:$0xff] }
  0x1d   : > { %482 = vst [vmem:[%s1902_s27 + $0x40] sm:$0xff] %v481_v8  ;;  %v501_v18 = vld [vmem:[%s1897_s26 + $0x120] sm:$0xff]  ;;  %v503_v19 = vld [vmem:[%s1897_s26 + $0x130] sm:$0xff] }
  0x1e   : > { %484 = vst [vmem:[%s1902_s27 + $0x48] sm:$0xff] %v483_v9  ;;  %v505_v20 = vld [vmem:[%s1897_s26 + $0x140] sm:$0xff]  ;;  %v507_v21 = vld [vmem:[%s1897_s26 + $0x150] sm:$0xff] }
  0x1f   : > { %486 = vst [vmem:[%s1902_s27 + $0x50] sm:$0xff] %v485_v10  ;;  %v509_v22 = vld [vmem:[%s1897_s26 + $0x160] sm:$0xff]  ;;  %v511_v23 = vld [vmem:[%s1897_s26 + $0x170] sm:$0xff] }
  0x20   : > { %488 = vst [vmem:[%s1902_s27 + $0x58] sm:$0xff] %v487_v11  ;;  %v513_v24 = vld [vmem:[%s1897_s26 + $0x180] sm:$0xff]  ;;  %v515_v25 = vld [vmem:[%s1897_s26 + $0x190] sm:$0xff] }
  0x21   : > { %490 = vst [vmem:[%s1902_s27 + $0x60] sm:$0xff] %v489_v12  ;;  %v517_v26 = vld [vmem:[%s1897_s26 + $0x1a0] sm:$0xff]  ;;  %v519_v27 = vld [vmem:[%s1897_s26 + $0x1b0] sm:$0xff] }
  0x22   : > { %492 = vst [vmem:[%s1902_s27 + $0x68] sm:$0xff] %v491_v13  ;;  %v521_v28 = vld [vmem:[%s1897_s26 + $0x1c0] sm:$0xff]  ;;  %v523_v29 = vld [vmem:[%s1897_s26 + $0x1d0] sm:$0xff] }
  0x23   : > { %494 = vst [vmem:[%s1902_s27 + $0x70] sm:$0xff] %v493_v14  ;;  %v525_v30 = vld [vmem:[%s1897_s26 + $0x1e0] sm:$0xff]  ;;  %v527_v31 = vld [vmem:[%s1897_s26 + $0x1f0] sm:$0xff] }
  0x24   : > { %496 = vst [vmem:[%s1902_s27 + $0x78] sm:$0xff] %v495_v15  ;;  %v529_v32 = vld [vmem:[%s1897_s26 + $0x200] sm:$0xff]  ;;  %v531_v33 = vld [vmem:[%s1897_s26 + $0x210] sm:$0xff] }
  0x25   : > { %498 = vst [vmem:[%s1902_s27 + $0x80] sm:$0xff] %v497_v16  ;;  %v533_v34 = vld [vmem:[%s1897_s26 + $0x220] sm:$0xff]  ;;  %v535_v35 = vld [vmem:[%s1897_s26 + $0x230] sm:$0xff] }
  0x26   : > { %500 = vst [vmem:[%s1902_s27 + $0x88] sm:$0xff] %v499_v17  ;;  %v537_v36 = vld [vmem:[%s1897_s26 + $0x240] sm:$0xff]  ;;  %v539_v37 = vld [vmem:[%s1897_s26 + $0x250] sm:$0xff] }
  0x27   : > { %502 = vst [vmem:[%s1902_s27 + $0x90] sm:$0xff] %v501_v18  ;;  %v541_v38 = vld [vmem:[%s1897_s26 + $0x260] sm:$0xff]  ;;  %v543_v39 = vld [vmem:[%s1897_s26 + $0x270] sm:$0xff] }
  0x28   : > { %504 = vst [vmem:[%s1902_s27 + $0x98] sm:$0xff] %v503_v19  ;;  %v545_v40 = vld [vmem:[%s1897_s26 + $0x280] sm:$0xff]  ;;  %v547_v41 = vld [vmem:[%s1897_s26 + $0x290] sm:$0xff] }
  0x29   : > { %506 = vst [vmem:[%s1902_s27 + $0xa0] sm:$0xff] %v505_v20  ;;  %v549_v42 = vld [vmem:[%s1897_s26 + $0x2a0] sm:$0xff]  ;;  %v551_v43 = vld [vmem:[%s1897_s26 + $0x2b0] sm:$0xff] }
  0x2a   : > { %508 = vst [vmem:[%s1902_s27 + $0xa8] sm:$0xff] %v507_v21  ;;  %v553_v44 = vld [vmem:[%s1897_s26 + $0x2c0] sm:$0xff]  ;;  %v555_v45 = vld [vmem:[%s1897_s26 + $0x2d0] sm:$0xff] }
  0x2b   : > { %510 = vst [vmem:[%s1902_s27 + $0xb0] sm:$0xff] %v509_v22  ;;  %v557_v46 = vld [vmem:[%s1897_s26 + $0x2e0] sm:$0xff]  ;;  %v559_v47 = vld [vmem:[%s1897_s26 + $0x2f0] sm:$0xff] }
  0x2c   : > { %512 = vst [vmem:[%s1902_s27 + $0xb8] sm:$0xff] %v511_v23  ;;  %v561_v48 = vld [vmem:[%s1897_s26 + $0x300] sm:$0xff]  ;;  %v563_v49 = vld [vmem:[%s1897_s26 + $0x310] sm:$0xff] }
  0x2d   : > { %514 = vst [vmem:[%s1902_s27 + $0xc0] sm:$0xff] %v513_v24  ;;  %v565_v50 = vld [vmem:[%s1897_s26 + $0x320] sm:$0xff]  ;;  %v567_v51 = vld [vmem:[%s1897_s26 + $0x330] sm:$0xff] }
  0x2e   : > { %516 = vst [vmem:[%s1902_s27 + $0xc8] sm:$0xff] %v515_v25  ;;  %v569_v52 = vld [vmem:[%s1897_s26 + $0x340] sm:$0xff]  ;;  %v571_v53 = vld [vmem:[%s1897_s26 + $0x350] sm:$0xff] }
  0x2f   : > { %518 = vst [vmem:[%s1902_s27 + $0xd0] sm:$0xff] %v517_v26  ;;  %v573_v54 = vld [vmem:[%s1897_s26 + $0x360] sm:$0xff]  ;;  %v575_v55 = vld [vmem:[%s1897_s26 + $0x370] sm:$0xff] }
  0x30   : > { %520 = vst [vmem:[%s1902_s27 + $0xd8] sm:$0xff] %v519_v27  ;;  %v577_v56 = vld [vmem:[%s1897_s26 + $0x380] sm:$0xff]  ;;  %v579_v57 = vld [vmem:[%s1897_s26 + $0x390] sm:$0xff] }
  0x31   : > { %522 = vst [vmem:[%s1902_s27 + $0xe0] sm:$0xff] %v521_v28  ;;  %v581_v58 = vld [vmem:[%s1897_s26 + $0x3a0] sm:$0xff]  ;;  %v583_v59 = vld [vmem:[%s1897_s26 + $0x3b0] sm:$0xff] }
  0x32   : > { %524 = vst [vmem:[%s1902_s27 + $0xe8] sm:$0xff] %v523_v29  ;;  %v585_v60 = vld [vmem:[%s1897_s26 + $0x3c0] sm:$0xff]  ;;  %v587_v61 = vld [vmem:[%s1897_s26 + $0x3d0] sm:$0xff] }
  0x33   : > { %526 = vst [vmem:[%s1902_s27 + $0xf0] sm:$0xff] %v525_v30  ;;  %v589_v62 = vld [vmem:[%s1897_s26 + $0x3e0] sm:$0xff]  ;;  %v591_v63 = vld [vmem:[%s1897_s26 + $0x3f0] sm:$0xff] }
  0x34   : > { %528 = vst [vmem:[%s1902_s27 + $0xf8] sm:$0xff] %v527_v31  ;;  %v593_v0 = vld [vmem:[%s1897_s26 + $0x400] sm:$0xff]  ;;  %v595_v1 = vld [vmem:[%s1897_s26 + $0x410] sm:$0xff] }
  0x35   : > { %530 = vst [vmem:[%s1902_s27 + $0x100] sm:$0xff] %v529_v32  ;;  %v597_v2 = vld [vmem:[%s1897_s26 + $0x420] sm:$0xff]  ;;  %v599_v3 = vld [vmem:[%s1897_s26 + $0x430] sm:$0xff] }
  0x36   : > { %532 = vst [vmem:[%s1902_s27 + $0x108] sm:$0xff] %v531_v33  ;;  %v601_v4 = vld [vmem:[%s1897_s26 + $0x440] sm:$0xff]  ;;  %v603_v5 = vld [vmem:[%s1897_s26 + $0x450] sm:$0xff] }
  0x37   : > { %534 = vst [vmem:[%s1902_s27 + $0x110] sm:$0xff] %v533_v34  ;;  %v605_v6 = vld [vmem:[%s1897_s26 + $0x460] sm:$0xff]  ;;  %v607_v7 = vld [vmem:[%s1897_s26 + $0x470] sm:$0xff] }
  0x38   : > { %536 = vst [vmem:[%s1902_s27 + $0x118] sm:$0xff] %v535_v35  ;;  %v609_v8 = vld [vmem:[%s1897_s26 + $0x480] sm:$0xff]  ;;  %v611_v9 = vld [vmem:[%s1897_s26 + $0x490] sm:$0xff] }
  0x39   : > { %538 = vst [vmem:[%s1902_s27 + $0x120] sm:$0xff] %v537_v36  ;;  %v613_v10 = vld [vmem:[%s1897_s26 + $0x4a0] sm:$0xff]  ;;  %v615_v11 = vld [vmem:[%s1897_s26 + $0x4b0] sm:$0xff] }
  0x3a   : > { %540 = vst [vmem:[%s1902_s27 + $0x128] sm:$0xff] %v539_v37  ;;  %v617_v12 = vld [vmem:[%s1897_s26 + $0x4c0] sm:$0xff]  ;;  %v619_v13 = vld [vmem:[%s1897_s26 + $0x4d0] sm:$0xff] }
  0x3b   : > { %542 = vst [vmem:[%s1902_s27 + $0x130] sm:$0xff] %v541_v38  ;;  %v621_v14 = vld [vmem:[%s1897_s26 + $0x4e0] sm:$0xff]  ;;  %v623_v15 = vld [vmem:[%s1897_s26 + $0x4f0] sm:$0xff] }
  0x3c   : > { %544 = vst [vmem:[%s1902_s27 + $0x138] sm:$0xff] %v543_v39  ;;  %v625_v16 = vld [vmem:[%s1897_s26 + $0x500] sm:$0xff]  ;;  %v627_v17 = vld [vmem:[%s1897_s26 + $0x510] sm:$0xff] }
  0x3d   : > { %546 = vst [vmem:[%s1902_s27 + $0x140] sm:$0xff] %v545_v40  ;;  %v629_v18 = vld [vmem:[%s1897_s26 + $0x520] sm:$0xff]  ;;  %v631_v19 = vld [vmem:[%s1897_s26 + $0x530] sm:$0xff] }
  0x3e   : > { %548 = vst [vmem:[%s1902_s27 + $0x148] sm:$0xff] %v547_v41  ;;  %v633_v20 = vld [vmem:[%s1897_s26 + $0x540] sm:$0xff]  ;;  %v635_v21 = vld [vmem:[%s1897_s26 + $0x550] sm:$0xff] }
  0x3f   : > { %550 = vst [vmem:[%s1902_s27 + $0x150] sm:$0xff] %v549_v42  ;;  %v637_v22 = vld [vmem:[%s1897_s26 + $0x560] sm:$0xff]  ;;  %v639_v23 = vld [vmem:[%s1897_s26 + $0x570] sm:$0xff] }
  0x40   : > { %552 = vst [vmem:[%s1902_s27 + $0x158] sm:$0xff] %v551_v43  ;;  %v641_v24 = vld [vmem:[%s1897_s26 + $0x580] sm:$0xff]  ;;  %v643_v25 = vld [vmem:[%s1897_s26 + $0x590] sm:$0xff] }
  0x41   : > { %554 = vst [vmem:[%s1902_s27 + $0x160] sm:$0xff] %v553_v44  ;;  %v645_v26 = vld [vmem:[%s1897_s26 + $0x5a0] sm:$0xff]  ;;  %v647_v27 = vld [vmem:[%s1897_s26 + $0x5b0] sm:$0xff] }
  0x42   : > { %556 = vst [vmem:[%s1902_s27 + $0x168] sm:$0xff] %v555_v45  ;;  %v649_v28 = vld [vmem:[%s1897_s26 + $0x5c0] sm:$0xff]  ;;  %v651_v29 = vld [vmem:[%s1897_s26 + $0x5d0] sm:$0xff] }
  0x43   : > { %558 = vst [vmem:[%s1902_s27 + $0x170] sm:$0xff] %v557_v46  ;;  %v653_v30 = vld [vmem:[%s1897_s26 + $0x5e0] sm:$0xff]  ;;  %v655_v31 = vld [vmem:[%s1897_s26 + $0x5f0] sm:$0xff] }
  0x44   : > { %560 = vst [vmem:[%s1902_s27 + $0x178] sm:$0xff] %v559_v47  ;;  %v657_v32 = vld [vmem:[%s1897_s26 + $0x600] sm:$0xff]  ;;  %v659_v33 = vld [vmem:[%s1897_s26 + $0x610] sm:$0xff] }
  0x45   : > { %562 = vst [vmem:[%s1902_s27 + $0x180] sm:$0xff] %v561_v48  ;;  %v661_v34 = vld [vmem:[%s1897_s26 + $0x620] sm:$0xff]  ;;  %v663_v35 = vld [vmem:[%s1897_s26 + $0x630] sm:$0xff] }
  0x46   : > { %564 = vst [vmem:[%s1902_s27 + $0x188] sm:$0xff] %v563_v49  ;;  %v665_v36 = vld [vmem:[%s1897_s26 + $0x640] sm:$0xff]  ;;  %v667_v37 = vld [vmem:[%s1897_s26 + $0x650] sm:$0xff] }
  0x47   : > { %566 = vst [vmem:[%s1902_s27 + $0x190] sm:$0xff] %v565_v50  ;;  %v669_v38 = vld [vmem:[%s1897_s26 + $0x660] sm:$0xff]  ;;  %v671_v39 = vld [vmem:[%s1897_s26 + $0x670] sm:$0xff] }
  0x48   : > { %568 = vst [vmem:[%s1902_s27 + $0x198] sm:$0xff] %v567_v51  ;;  %v673_v40 = vld [vmem:[%s1897_s26 + $0x680] sm:$0xff]  ;;  %v675_v41 = vld [vmem:[%s1897_s26 + $0x690] sm:$0xff] }
  0x49   : > { %570 = vst [vmem:[%s1902_s27 + $0x1a0] sm:$0xff] %v569_v52  ;;  %v677_v42 = vld [vmem:[%s1897_s26 + $0x6a0] sm:$0xff]  ;;  %v679_v43 = vld [vmem:[%s1897_s26 + $0x6b0] sm:$0xff] }
  0x4a   : > { %572 = vst [vmem:[%s1902_s27 + $0x1a8] sm:$0xff] %v571_v53  ;;  %v681_v44 = vld [vmem:[%s1897_s26 + $0x6c0] sm:$0xff]  ;;  %v683_v45 = vld [vmem:[%s1897_s26 + $0x6d0] sm:$0xff] }
  0x4b   : > { %574 = vst [vmem:[%s1902_s27 + $0x1b0] sm:$0xff] %v573_v54  ;;  %v685_v46 = vld [vmem:[%s1897_s26 + $0x6e0] sm:$0xff]  ;;  %v687_v47 = vld [vmem:[%s1897_s26 + $0x6f0] sm:$0xff] }
  0x4c   : > { %576 = vst [vmem:[%s1902_s27 + $0x1b8] sm:$0xff] %v575_v55  ;;  %v689_v48 = vld [vmem:[%s1897_s26 + $0x700] sm:$0xff]  ;;  %v691_v49 = vld [vmem:[%s1897_s26 + $0x710] sm:$0xff] }
  0x4d   : > { %578 = vst [vmem:[%s1902_s27 + $0x1c0] sm:$0xff] %v577_v56  ;;  %v693_v50 = vld [vmem:[%s1897_s26 + $0x720] sm:$0xff]  ;;  %v695_v51 = vld [vmem:[%s1897_s26 + $0x730] sm:$0xff] }
  0x4e   : > { %580 = vst [vmem:[%s1902_s27 + $0x1c8] sm:$0xff] %v579_v57  ;;  %v697_v52 = vld [vmem:[%s1897_s26 + $0x740] sm:$0xff]  ;;  %v699_v53 = vld [vmem:[%s1897_s26 + $0x750] sm:$0xff] }
  0x4f   : > { %582 = vst [vmem:[%s1902_s27 + $0x1d0] sm:$0xff] %v581_v58  ;;  %v701_v54 = vld [vmem:[%s1897_s26 + $0x760] sm:$0xff]  ;;  %v703_v55 = vld [vmem:[%s1897_s26 + $0x770] sm:$0xff] }
  0x50   : > { %584 = vst [vmem:[%s1902_s27 + $0x1d8] sm:$0xff] %v583_v59  ;;  %v705_v56 = vld [vmem:[%s1897_s26 + $0x780] sm:$0xff]  ;;  %v707_v57 = vld [vmem:[%s1897_s26 + $0x790] sm:$0xff] }
  0x51   : > { %586 = vst [vmem:[%s1902_s27 + $0x1e0] sm:$0xff] %v585_v60  ;;  %v709_v58 = vld [vmem:[%s1897_s26 + $0x7a0] sm:$0xff]  ;;  %v711_v59 = vld [vmem:[%s1897_s26 + $0x7b0] sm:$0xff] }
  0x52   : > { %588 = vst [vmem:[%s1902_s27 + $0x1e8] sm:$0xff] %v587_v61  ;;  %v713_v60 = vld [vmem:[%s1897_s26 + $0x7c0] sm:$0xff]  ;;  %v715_v61 = vld [vmem:[%s1897_s26 + $0x7d0] sm:$0xff] }
  0x53   : > { %590 = vst [vmem:[%s1902_s27 + $0x1f0] sm:$0xff] %v589_v62  ;;  %v717_v62 = vld [vmem:[%s1897_s26 + $0x7e0] sm:$0xff] }
  0x54   : > { %592 = vst [vmem:[%s1902_s27 + $0x1f8] sm:$0xff] %v591_v63  ;;  %v719_v63 = vld [vmem:[%s1897_s26 + $0x7f0] sm:$0xff] }
  0x55   : > { %594 = vst [vmem:[%s1902_s27 + $0x200] sm:$0xff] %v593_v0  ;;  %v721_v0 = vld [vmem:[%s1897_s26 + $0x800] sm:$0xff] }
  0x56   : > { %596 = vst [vmem:[%s1902_s27 + $0x208] sm:$0xff] %v595_v1  ;;  %v723_v1 = vld [vmem:[%s1897_s26 + $0x810] sm:$0xff] }
  0x57   : > { %598 = vst [vmem:[%s1902_s27 + $0x210] sm:$0xff] %v597_v2  ;;  %v725_v2 = vld [vmem:[%s1897_s26 + $0x820] sm:$0xff] }
  0x58   : > { %600 = vst [vmem:[%s1902_s27 + $0x218] sm:$0xff] %v599_v3  ;;  %v727_v3 = vld [vmem:[%s1897_s26 + $0x830] sm:$0xff] }
  0x59   : > { %602 = vst [vmem:[%s1902_s27 + $0x220] sm:$0xff] %v601_v4  ;;  %v729_v4 = vld [vmem:[%s1897_s26 + $0x840] sm:$0xff] }
  0x5a   : > { %604 = vst [vmem:[%s1902_s27 + $0x228] sm:$0xff] %v603_v5  ;;  %v731_v5 = vld [vmem:[%s1897_s26 + $0x850] sm:$0xff] }
  0x5b   : > { %606 = vst [vmem:[%s1902_s27 + $0x230] sm:$0xff] %v605_v6  ;;  %v733_v6 = vld [vmem:[%s1897_s26 + $0x860] sm:$0xff] }
  0x5c   : > { %608 = vst [vmem:[%s1902_s27 + $0x238] sm:$0xff] %v607_v7  ;;  %v735_v7 = vld [vmem:[%s1897_s26 + $0x870] sm:$0xff] }
  0x5d   : > { %610 = vst [vmem:[%s1902_s27 + $0x240] sm:$0xff] %v609_v8  ;;  %v737_v8 = vld [vmem:[%s1897_s26 + $0x880] sm:$0xff] }
  0x5e   : > { %612 = vst [vmem:[%s1902_s27 + $0x248] sm:$0xff] %v611_v9  ;;  %v739_v9 = vld [vmem:[%s1897_s26 + $0x890] sm:$0xff] }
  0x5f   : > { %614 = vst [vmem:[%s1902_s27 + $0x250] sm:$0xff] %v613_v10  ;;  %v741_v10 = vld [vmem:[%s1897_s26 + $0x8a0] sm:$0xff] }
  0x60   : > { %616 = vst [vmem:[%s1902_s27 + $0x258] sm:$0xff] %v615_v11  ;;  %v743_v11 = vld [vmem:[%s1897_s26 + $0x8b0] sm:$0xff] }
  0x61   : > { %618 = vst [vmem:[%s1902_s27 + $0x260] sm:$0xff] %v617_v12  ;;  %v745_v12 = vld [vmem:[%s1897_s26 + $0x8c0] sm:$0xff] }
  0x62   : > { %620 = vst [vmem:[%s1902_s27 + $0x268] sm:$0xff] %v619_v13  ;;  %v747_v13 = vld [vmem:[%s1897_s26 + $0x8d0] sm:$0xff] }
  0x63   : > { %622 = vst [vmem:[%s1902_s27 + $0x270] sm:$0xff] %v621_v14  ;;  %v749_v14 = vld [vmem:[%s1897_s26 + $0x8e0] sm:$0xff] }
  0x64   : > { %624 = vst [vmem:[%s1902_s27 + $0x278] sm:$0xff] %v623_v15  ;;  %v751_v15 = vld [vmem:[%s1897_s26 + $0x8f0] sm:$0xff] }
  0x65   : > { %626 = vst [vmem:[%s1902_s27 + $0x280] sm:$0xff] %v625_v16  ;;  %v753_v16 = vld [vmem:[%s1897_s26 + $0x900] sm:$0xff] }
  0x66   : > { %628 = vst [vmem:[%s1902_s27 + $0x288] sm:$0xff] %v627_v17  ;;  %v755_v17 = vld [vmem:[%s1897_s26 + $0x910] sm:$0xff] }
  0x67   : > { %630 = vst [vmem:[%s1902_s27 + $0x290] sm:$0xff] %v629_v18  ;;  %v757_v18 = vld [vmem:[%s1897_s26 + $0x920] sm:$0xff] }
  0x68   : > { %632 = vst [vmem:[%s1902_s27 + $0x298] sm:$0xff] %v631_v19  ;;  %v759_v19 = vld [vmem:[%s1897_s26 + $0x930] sm:$0xff] }
  0x69   : > { %634 = vst [vmem:[%s1902_s27 + $0x2a0] sm:$0xff] %v633_v20  ;;  %v761_v20 = vld [vmem:[%s1897_s26 + $0x940] sm:$0xff] }
  0x6a   : > { %636 = vst [vmem:[%s1902_s27 + $0x2a8] sm:$0xff] %v635_v21  ;;  %v763_v21 = vld [vmem:[%s1897_s26 + $0x950] sm:$0xff] }
  0x6b   : > { %638 = vst [vmem:[%s1902_s27 + $0x2b0] sm:$0xff] %v637_v22  ;;  %v765_v22 = vld [vmem:[%s1897_s26 + $0x960] sm:$0xff] }
  0x6c   : > { %640 = vst [vmem:[%s1902_s27 + $0x2b8] sm:$0xff] %v639_v23  ;;  %v767_v23 = vld [vmem:[%s1897_s26 + $0x970] sm:$0xff] }
  0x6d   : > { %642 = vst [vmem:[%s1902_s27 + $0x2c0] sm:$0xff] %v641_v24  ;;  %v769_v24 = vld [vmem:[%s1897_s26 + $0x980] sm:$0xff] }
  0x6e   : > { %644 = vst [vmem:[%s1902_s27 + $0x2c8] sm:$0xff] %v643_v25  ;;  %v771_v25 = vld [vmem:[%s1897_s26 + $0x990] sm:$0xff] }
  0x6f   : > { %646 = vst [vmem:[%s1902_s27 + $0x2d0] sm:$0xff] %v645_v26  ;;  %v773_v26 = vld [vmem:[%s1897_s26 + $0x9a0] sm:$0xff] }
  0x70   : > { %648 = vst [vmem:[%s1902_s27 + $0x2d8] sm:$0xff] %v647_v27  ;;  %v775_v27 = vld [vmem:[%s1897_s26 + $0x9b0] sm:$0xff] }
  0x71   : > { %650 = vst [vmem:[%s1902_s27 + $0x2e0] sm:$0xff] %v649_v28  ;;  %v777_v28 = vld [vmem:[%s1897_s26 + $0x9c0] sm:$0xff] }
  0x72   : > { %652 = vst [vmem:[%s1902_s27 + $0x2e8] sm:$0xff] %v651_v29  ;;  %v779_v29 = vld [vmem:[%s1897_s26 + $0x9d0] sm:$0xff] }
  0x73   : > { %654 = vst [vmem:[%s1902_s27 + $0x2f0] sm:$0xff] %v653_v30  ;;  %v781_v30 = vld [vmem:[%s1897_s26 + $0x9e0] sm:$0xff] }
  0x74   : > { %656 = vst [vmem:[%s1902_s27 + $0x2f8] sm:$0xff] %v655_v31  ;;  %v783_v31 = vld [vmem:[%s1897_s26 + $0x9f0] sm:$0xff] }
  0x75   : > { %658 = vst [vmem:[%s1902_s27 + $0x300] sm:$0xff] %v657_v32  ;;  %v785_v32 = vld [vmem:[%s1897_s26 + $0xa00] sm:$0xff] }
  0x76   : > { %660 = vst [vmem:[%s1902_s27 + $0x308] sm:$0xff] %v659_v33  ;;  %v787_v33 = vld [vmem:[%s1897_s26 + $0xa10] sm:$0xff] }
  0x77   : > { %662 = vst [vmem:[%s1902_s27 + $0x310] sm:$0xff] %v661_v34 }
  0x78   : > { %664 = vst [vmem:[%s1902_s27 + $0x318] sm:$0xff] %v663_v35 }
  0x79   : > { %666 = vst [vmem:[%s1902_s27 + $0x320] sm:$0xff] %v665_v36 }
  0x7a   : > { %668 = vst [vmem:[%s1902_s27 + $0x328] sm:$0xff] %v667_v37 }
  0x7b   : > { %670 = vst [vmem:[%s1902_s27 + $0x330] sm:$0xff] %v669_v38 }
  0x7c   : > { %672 = vst [vmem:[%s1902_s27 + $0x338] sm:$0xff] %v671_v39 }
  0x7d   : > { %674 = vst [vmem:[%s1902_s27 + $0x340] sm:$0xff] %v673_v40 }
  0x7e   : > { %676 = vst [vmem:[%s1902_s27 + $0x348] sm:$0xff] %v675_v41 }
  0x7f   : > { %678 = vst [vmem:[%s1902_s27 + $0x350] sm:$0xff] %v677_v42 }
  0x80   : > { %680 = vst [vmem:[%s1902_s27 + $0x358] sm:$0xff] %v679_v43 }
  0x81   : > { %682 = vst [vmem:[%s1902_s27 + $0x360] sm:$0xff] %v681_v44 }
  0x82   : > { %684 = vst [vmem:[%s1902_s27 + $0x368] sm:$0xff] %v683_v45 }
  0x83   : > { %686 = vst [vmem:[%s1902_s27 + $0x370] sm:$0xff] %v685_v46 }
  0x84   : > { %688 = vst [vmem:[%s1902_s27 + $0x378] sm:$0xff] %v687_v47 }
  0x85   : > { %690 = vst [vmem:[%s1902_s27 + $0x380] sm:$0xff] %v689_v48 }
  0x86   : > { %692 = vst [vmem:[%s1902_s27 + $0x388] sm:$0xff] %v691_v49 }
  0x87   : > { %694 = vst [vmem:[%s1902_s27 + $0x390] sm:$0xff] %v693_v50 }
  0x88   : > { %696 = vst [vmem:[%s1902_s27 + $0x398] sm:$0xff] %v695_v51 }
  0x89   : > { %698 = vst [vmem:[%s1902_s27 + $0x3a0] sm:$0xff] %v697_v52 }
  0x8a   : > { %700 = vst [vmem:[%s1902_s27 + $0x3a8] sm:$0xff] %v699_v53 }
  0x8b   : > { %702 = vst [vmem:[%s1902_s27 + $0x3b0] sm:$0xff] %v701_v54 }
  0x8c   : > { %704 = vst [vmem:[%s1902_s27 + $0x3b8] sm:$0xff] %v703_v55 }
  0x8d   : > { %706 = vst [vmem:[%s1902_s27 + $0x3c0] sm:$0xff] %v705_v56 }
  0x8e   : > { %708 = vst [vmem:[%s1902_s27 + $0x3c8] sm:$0xff] %v707_v57 }
  0x8f   : > { %710 = vst [vmem:[%s1902_s27 + $0x3d0] sm:$0xff] %v709_v58 }
  0x90   : > { %712 = vst [vmem:[%s1902_s27 + $0x3d8] sm:$0xff] %v711_v59 }
  0x91   : > { %714 = vst [vmem:[%s1902_s27 + $0x3e0] sm:$0xff] %v713_v60 }
  0x92   : > { %716 = vst [vmem:[%s1902_s27 + $0x3e8] sm:$0xff] %v715_v61 }
  0x93   : > { %718 = vst [vmem:[%s1902_s27 + $0x3f0] sm:$0xff] %v717_v62 }
  0x94   : > { %720 = vst [vmem:[%s1902_s27 + $0x3f8] sm:$0xff] %v719_v63 }
  0x95   : > { %722 = vst [vmem:[%s1902_s27 + $0x400] sm:$0xff] %v721_v0 }
  0x96   : > { %724 = vst [vmem:[%s1902_s27 + $0x408] sm:$0xff] %v723_v1 }
  0x97   : > { %726 = vst [vmem:[%s1902_s27 + $0x410] sm:$0xff] %v725_v2 }
  0x98   : > { %728 = vst [vmem:[%s1902_s27 + $0x418] sm:$0xff] %v727_v3 }
  0x99   : > { %730 = vst [vmem:[%s1902_s27 + $0x420] sm:$0xff] %v729_v4 }
  0x9a   : > { %732 = vst [vmem:[%s1902_s27 + $0x428] sm:$0xff] %v731_v5 }
  0x9b   : > { %734 = vst [vmem:[%s1902_s27 + $0x430] sm:$0xff] %v733_v6 }
  0x9c   : > { %736 = vst [vmem:[%s1902_s27 + $0x438] sm:$0xff] %v735_v7 }
  0x9d   : > { %738 = vst [vmem:[%s1902_s27 + $0x440] sm:$0xff] %v737_v8 }
  0x9e   : > { %740 = vst [vmem:[%s1902_s27 + $0x448] sm:$0xff] %v739_v9 }
  0x9f   : > { %742 = vst [vmem:[%s1902_s27 + $0x450] sm:$0xff] %v741_v10 }
  0xa0   : > { %744 = vst [vmem:[%s1902_s27 + $0x458] sm:$0xff] %v743_v11 }
  0xa1   : > { %746 = vst [vmem:[%s1902_s27 + $0x460] sm:$0xff] %v745_v12 }
  0xa2   : > { %748 = vst [vmem:[%s1902_s27 + $0x468] sm:$0xff] %v747_v13 }
  0xa3   : > { %750 = vst [vmem:[%s1902_s27 + $0x470] sm:$0xff] %v749_v14 }
  0xa4   : > { %752 = vst [vmem:[%s1902_s27 + $0x478] sm:$0xff] %v751_v15 }
  0xa5   : > { %754 = vst [vmem:[%s1902_s27 + $0x480] sm:$0xff] %v753_v16 }
  0xa6   : > { %756 = vst [vmem:[%s1902_s27 + $0x488] sm:$0xff] %v755_v17 }
  0xa7   : > { %758 = vst [vmem:[%s1902_s27 + $0x490] sm:$0xff] %v757_v18 }
  0xa8   : > { %760 = vst [vmem:[%s1902_s27 + $0x498] sm:$0xff] %v759_v19 }
  0xa9   : > { %762 = vst [vmem:[%s1902_s27 + $0x4a0] sm:$0xff] %v761_v20 }
  0xaa   : > { %764 = vst [vmem:[%s1902_s27 + $0x4a8] sm:$0xff] %v763_v21 }
  0xab   : > { %766 = vst [vmem:[%s1902_s27 + $0x4b0] sm:$0xff] %v765_v22 }
  0xac   : > { %768 = vst [vmem:[%s1902_s27 + $0x4b8] sm:$0xff] %v767_v23 }
  0xad   : > { %770 = vst [vmem:[%s1902_s27 + $0x4c0] sm:$0xff] %v769_v24 }
  0xae   : > { %772 = vst [vmem:[%s1902_s27 + $0x4c8] sm:$0xff] %v771_v25 }
  0xaf   : > { %774 = vst [vmem:[%s1902_s27 + $0x4d0] sm:$0xff] %v773_v26 }
  0xb0   : > { %776 = vst [vmem:[%s1902_s27 + $0x4d8] sm:$0xff] %v775_v27 }
  0xb1   : > { %778 = vst [vmem:[%s1902_s27 + $0x4e0] sm:$0xff] %v777_v28 }
  0xb2   : > { %780 = vst [vmem:[%s1902_s27 + $0x4e8] sm:$0xff] %v779_v29 }
  0xb3   : > { %782 = vst [vmem:[%s1902_s27 + $0x4f0] sm:$0xff] %v781_v30 }
  0xb4   : > { %784 = vst [vmem:[%s1902_s27 + $0x4f8] sm:$0xff] %v783_v31 }
  0xb5   : > { %786 = vst [vmem:[%s1902_s27 + $0x500] sm:$0xff] %v785_v32 }
  0xb6   : > { %788 = vst [vmem:[%s1902_s27 + $0x508] sm:$0xff] %v787_v33 }
  0xb7 PF: > { %p1671_p10 = scmp.ge.s32.totalorder %s1823_s12, 1  ;;  %p793_p11 = scmp.lt.s32.totalorder %s1823_s12, 3 }
  0xb9   : > { %p794_p12 = pnand %p1671_p10, %p793_p11 }
  0xba   : > { %s2228_s28 = sand.u32 (!%p794_p12), 1, %s1815_s10   ;;  %s1781_s21 = scalar_lea.hbm (!%p794_p12), %s2764_s2, 112 }
  0xbb   : > { %797 = sbr.rel (%p794_p12) target bundleno = 519 (0x207), region = 62 }
  0xbc   : > { %s1717_s29 = smul.u32 (!%p794_p12), 1296, %s2228_s28 }
  0xbd   : > { %s1718_s26 = smul.u32 (!%p794_p12), 56, %s2228_s28 }
  0xbe   : > { %s2231_s30 = scalar_lea.vmem (!%p794_p12), [#allocation2], %s1717_s29  ;;  %s1679_s29 = sshll.u32 (!%p794_p12), %s1666_s13, 3 }
  0xbf   : > { %s2712_s27 = scalar_lea.vmem (!%p794_p12), [#allocation3], %s1718_s26  ;;  %s1595_s5 = scalar_lea.hbm (!%p794_p12), %s2764_s2, %s1679_s29 }
  0xc0   : > { %v990_v34 = vld [vmem:[%s2231_s30 + $0x78] sm:$0xff]  ;;  %v989_v37 = vld [vmem:[%s2231_s30 + $0x70] sm:$0xff]  ;;  %v988_v40 = vld [vmem:[%s2231_s30 + $0x68] sm:$0xff]  ;;  %vm1137_vm0 = vcmask 130048   ;;  %s1596_s6 = sshll.u32 %s2712_s27, 4  ;;  %s2728_s7 = sshll.u32 %s1595_s5, 4  ;;  %s1597_s6 = int_to_ptr.vmem [resolvable:$true] %s1596_s6  ;;  %s1599_s7 = int_to_ptr.hbm [resolvable:$true] %s2728_s7 }
  0xc1   : > { %v1006_v35 = vld [vmem:[%s2231_s30 + $0xf8] sm:$0xff]  ;;  %1159 = vmatpush.msra.mxu0 %v990_v34  ;;  %1682 = vmatpush.msra.mxu3 %v990_v34  ;;  %v1005_v38 = vld [vmem:[%s2231_s30 + $0xf0] sm:$0xff]  ;;  %v1004_v41 = vld [vmem:[%s2231_s30 + $0xe8] sm:$0xff]  ;;  %s1585_s13 = scalar_lea.sflag [#allocation4], %s2228_s28  ;;  %s1775_s8 = sshra.s32 %s1599_s7, 4  ;;  %s1776_s8 = int_to_ptr.hbm [resolvable:$true] %s1775_s8 }
  0xc2   : > { %v1022_v36 = vld [vmem:[%s2231_s30 + $0x178] sm:$0xff]  ;;  %v1021_v39 = vld [vmem:[%s2231_s30 + $0x170] sm:$0xff]  ;;  %1197 = vmatpush.msra.mxu1 %v1006_v35  ;;  %v1020_v42 = vld [vmem:[%s2231_s30 + $0x168] sm:$0xff]  ;;  %s1777_s14 = scalar_lea.hbm %s1776_s8, 56  ;;  %p1782_p2 = scmp.lt.s32.totalorder %s1776_s8, %s2764_s2 }
  0xc3   : > { %1235 = vmatpush.msra.mxu2 %v1022_v36  ;;  %1160 = vmatpush.msra.mxu0 %v989_v37  ;;  %v987_v43 = vld [vmem:[%s2231_s30 + $0x60] sm:$0xff]  ;;  %v986_v46 = vld [vmem:[%s2231_s30 + $0x58] sm:$0xff]  ;;  %v985_v49 = vld [vmem:[%s2231_s30 + $0x50] sm:$0xff]  ;;  %p1778_p13 = scmp.ne.s32.totalorder %s1776_s8, %s1777_s14  ;;  %p1783_p3 = scmp.lt.s32.totalorder %s1781_s21, %s1777_s14 }
  0xc4   : > { %1683 = vmatpush.msra.mxu3 %v989_v37  ;;  %1198 = vmatpush.msra.mxu1 %v1005_v38  ;;  %v1003_v44 = vld [vmem:[%s2231_s30 + $0xe0] sm:$0xff]  ;;  %v1002_v47 = vld [vmem:[%s2231_s30 + $0xd8] sm:$0xff]  ;;  %v1001_v50 = vld [vmem:[%s2231_s30 + $0xd0] sm:$0xff] }
  0xc5   : > { %1236 = vmatpush.msra.mxu2 %v1021_v39  ;;  %1161 = vmatpush.msra.mxu0 %v988_v40  ;;  %v1019_v45 = vld [vmem:[%s2231_s30 + $0x160] sm:$0xff]  ;;  %v1018_v48 = vld [vmem:[%s2231_s30 + $0x158] sm:$0xff]  ;;  %v1017_v51 = vld [vmem:[%s2231_s30 + $0x150] sm:$0xff]  ;;  %p1779_p0 = pnand %p1778_p13, %p1881_p6  ;;  %p1784_p4 = por %p1783_p3, %p1782_p2 }
  0xc6   : > { %1684 = vmatpush.msra.mxu3 %v988_v40  ;;  %1199 = vmatpush.msra.mxu1 %v1004_v41  ;;  %v984_v52 = vld [vmem:[%s2231_s30 + $0x48] sm:$0xff]  ;;  %v983_v55 = vld [vmem:[%s2231_s30 + $0x40] sm:$0xff]  ;;  %v982_v58 = vld [vmem:[%s2231_s30 + $0x38] sm:$0xff] }
  0xc7   : > { %1237 = vmatpush.msra.mxu2 %v1020_v42  ;;  %1162 = vmatpush.msra.mxu0 %v987_v43  ;;  %v1000_v53 = vld [vmem:[%s2231_s30 + $0xc8] sm:$0xff]  ;;  %v999_v56 = vld [vmem:[%s2231_s30 + $0xc0] sm:$0xff]  ;;  %v998_v59 = vld [vmem:[%s2231_s30 + $0xb8] sm:$0xff]  ;;  %p1780_p1 = pneg %p1779_p0 }
  0xc8   : > { %1685 = vmatpush.msra.mxu3 %v987_v43  ;;  %1200 = vmatpush.msra.mxu1 %v1003_v44  ;;  %v1016_v54 = vld [vmem:[%s2231_s30 + $0x148] sm:$0xff]  ;;  %v1015_v57 = vld [vmem:[%s2231_s30 + $0x140] sm:$0xff]  ;;  %v1014_v60 = vld [vmem:[%s2231_s30 + $0x138] sm:$0xff] }
  0xc9   : > { %1238 = vmatpush.msra.mxu2 %v1019_v45  ;;  %1163 = vmatpush.msra.mxu0 %v986_v46  ;;  %v981_v61 = vld [vmem:[%s2231_s30 + $0x30] sm:$0xff]  ;;  %v980_v0 = vld [vmem:[%s2231_s30 + $0x28] sm:$0xff]  ;;  %v979_v3 = vld [vmem:[%s2231_s30 + $0x20] sm:$0xff]  ;;  %p1785_p5 = pnand %p1784_p4, %p1780_p1 }
  0xca   : > { %1686 = vmatpush.msra.mxu3 %v986_v46  ;;  %1201 = vmatpush.msra.mxu1 %v1002_v47  ;;  %v997_v62 = vld [vmem:[%s2231_s30 + $0xb0] sm:$0xff]  ;;  %v996_v1 = vld [vmem:[%s2231_s30 + $0xa8] sm:$0xff]  ;;  %v995_v4 = vld [vmem:[%s2231_s30 + $0xa0] sm:$0xff] }
  0xcb   : > { %1239 = vmatpush.msra.mxu2 %v1018_v48  ;;  %1164 = vmatpush.msra.mxu0 %v985_v49  ;;  %v1013_v63 = vld [vmem:[%s2231_s30 + $0x130] sm:$0xff]  ;;  %v1012_v2 = vld [vmem:[%s2231_s30 + $0x128] sm:$0xff]  ;;  %v1011_v5 = vld [vmem:[%s2231_s30 + $0x120] sm:$0xff] }
  0xcc   : > { %1687 = vmatpush.msra.mxu3 %v985_v49  ;;  %1202 = vmatpush.msra.mxu1 %v1001_v50  ;;  %v978_v6 = vld [vmem:[%s2231_s30 + $0x18] sm:$0xff]  ;;  %v977_v9 = vld [vmem:[%s2231_s30 + $0x10] sm:$0xff]  ;;  %v976_v12 = vld [vmem:[%s2231_s30 + $0x8] sm:$0xff] }
  0xcd   : > { %1240 = vmatpush.msra.mxu2 %v1017_v51  ;;  %1165 = vmatpush.msra.mxu0 %v984_v52  ;;  %v994_v7 = vld [vmem:[%s2231_s30 + $0x98] sm:$0xff]  ;;  %v993_v10 = vld [vmem:[%s2231_s30 + $0x90] sm:$0xff]  ;;  %v992_v15 = vld [vmem:[%s2231_s30 + $0x88] sm:$0xff] }
  0xce   : > { %1688 = vmatpush.msra.mxu3 %v984_v52  ;;  %1203 = vmatpush.msra.mxu1 %v1000_v53  ;;  %v1010_v8 = vld [vmem:[%s2231_s30 + $0x118] sm:$0xff]  ;;  %v1009_v11 = vld [vmem:[%s2231_s30 + $0x110] sm:$0xff]  ;;  %v1008_v16 = vld [vmem:[%s2231_s30 + $0x108] sm:$0xff] }
  0xcf   : > { %1241 = vmatpush.msra.mxu2 %v1016_v54  ;;  %1166 = vmatpush.msra.mxu0 %v983_v55  ;;  %v821_v13 = vld [vmem:[%s2762_s0] sm:$0xff]  ;;  %v822_v14 = vld [vmem:[%s2762_s0 + $0x8] sm:$0xff]  ;;  %v823_v17 = vld [vmem:[%s2762_s0 + $0x10] sm:$0xff] }
  0xd0   : > { %1689 = vmatpush.msra.mxu3 %v983_v55  ;;  %1204 = vmatpush.msra.mxu1 %v999_v56  ;;  %v975_v18 = vld [vmem:[%s2231_s30] sm:$0xff]  ;;  %v898_v21 = vmax.f32 %v821_v13, 0.0  ;;  %v899_v22 = vmax.f32 %v822_v14, 0.0  ;;  %v900_v23 = vmax.f32 %v823_v17, 0.0  ;;  %v1038_v24 = vld [vmem:[%s2231_s30 + $0x1f8] sm:$0xff]  ;;  %v1037_v28 = vld [vmem:[%s2231_s30 + $0x1f0] sm:$0xff] }
  0xd1   : > { %1242 = vmatpush.msra.mxu2 %v1015_v57  ;;  %1167 = vmatpush.msra.mxu0 %v982_v58  ;;  %v991_v19 = vld [vmem:[%s2231_s30 + $0x80] sm:$0xff]  ;;  %v1086_v25 = vld [vmem:[%s2231_s30 + $0x378] sm:$0xff]  ;;  %v1053_v29 = vld [vmem:[%s2231_s30 + $0x270] sm:$0xff] }
  0xd2   : > { %1690 = vmatpush.msra.mxu3 %v982_v58  ;;  %1205 = vmatpush.msra.mxu1 %v998_v59  ;;  %v1007_v20 = vld [vmem:[%s2231_s30 + $0x100] sm:$0xff]  ;;  %v1054_v26 = vld [vmem:[%s2231_s30 + $0x278] sm:$0xff]  ;;  %v1036_v31 = vld [vmem:[%s2231_s30 + $0x1e8] sm:$0xff] }
  0xd3   : > { %1243 = vmatpush.msra.mxu2 %v1014_v60  ;;  %1168 = vmatpush.msra.mxu0 %v981_v61  ;;  %v865_v27 = vld [vmem:[%s2762_s0 + $0x160] sm:$0xff]  ;;  %v1070_v30 = vld [vmem:[%s2231_s30 + $0x2f8] sm:$0xff]  ;;  %v1052_v38 = vld [vmem:[%s2231_s30 + $0x268] sm:$0xff] }
  0xd4   : > { %1691 = vmatpush.msra.mxu3 %v981_v61  ;;  %1206 = vmatpush.msra.mxu1 %v997_v62  ;;  %v1085_v32 = vld [vmem:[%s2231_s30 + $0x370] sm:$0xff]  ;;  %v942_v34 = vmax.f32 %v865_v27, 0.0  ;;  %v832_v35 = vld [vmem:[%s2762_s0 + $0x58] sm:$0xff]  ;;  %v834_v36 = vld [vmem:[%s2762_s0 + $0x68] sm:$0xff] }
  0xd5   : > { %1244 = vmatpush.msra.mxu2 %v1013_v63  ;;  %1169 = vmatpush.msra.mxu0 %v980_v0  ;;  %v833_v33 = vld [vmem:[%s2762_s0 + $0x60] sm:$0xff]  ;;  %v1084_v40 = vld [vmem:[%s2231_s30 + $0x368] sm:$0xff]  ;;  %v909_v43 = vmax.f32 %v832_v35, 0.0  ;;  %v911_v44 = vmax.f32 %v834_v36, 0.0  ;;  %v1034_v45 = vld [vmem:[%s2231_s30 + $0x1d8] sm:$0xff] }
  0xd6   : > { %1692 = vmatpush.msra.mxu3 %v980_v0  ;;  %1207 = vmatpush.msra.mxu1 %v996_v1  ;;  %v1069_v37 = vld [vmem:[%s2231_s30 + $0x2f0] sm:$0xff]  ;;  %v1035_v39 = vld [vmem:[%s2231_s30 + $0x1e0] sm:$0xff]  ;;  %v910_v41 = vmax.f32 %v833_v33, 0.0  ;;  %v1050_v46 = vld [vmem:[%s2231_s30 + $0x258] sm:$0xff] }
  0xd7   : > { %1245 = vmatpush.msra.mxu2 %v1012_v2  ;;  %1170 = vmatpush.msra.mxu0 %v979_v3  ;;  %v1051_v42 = vld [vmem:[%s2231_s30 + $0x260] sm:$0xff]  ;;  %v1068_v47 = vld [vmem:[%s2231_s30 + $0x2e8] sm:$0xff]  ;;  %v1033_v50 = vld [vmem:[%s2231_s30 + $0x1d0] sm:$0xff] }
  0xd8   : > { %1693 = vmatpush.msra.mxu3 %v979_v3  ;;  %1208 = vmatpush.msra.mxu1 %v995_v4  ;;  %v1083_v48 = vld [vmem:[%s2231_s30 + $0x360] sm:$0xff]  ;;  %v876_v49 = vld [vmem:[%s2762_s0 + $0x1b8] sm:$0xff]  ;;  %v1049_v51 = vld [vmem:[%s2231_s30 + $0x250] sm:$0xff] }
  0xd9   : > { %1246 = vmatpush.msra.mxu2 %v1011_v5  ;;  %1171 = vmatpush.msra.mxu0 %v978_v6  ;;  %v1082_v52 = vld [vmem:[%s2231_s30 + $0x358] sm:$0xff]  ;;  %v1067_v53 = vld [vmem:[%s2231_s30 + $0x2e0] sm:$0xff]  ;;  %v1032_v56 = vld [vmem:[%s2231_s30 + $0x1c8] sm:$0xff]  ;;  %v953_v58 = vmax.f32 %v876_v49, 0.0 }
  0xda   : > { %1694 = vmatpush.msra.mxu3 %v978_v6  ;;  %1209 = vmatpush.msra.mxu1 %v994_v7  ;;  %v843_v54 = vld [vmem:[%s2762_s0 + $0xb0] sm:$0xff]  ;;  %v844_v55 = vld [vmem:[%s2762_s0 + $0xb8] sm:$0xff]  ;;  %v845_v59 = vld [vmem:[%s2762_s0 + $0xc0] sm:$0xff] }
  0xdb   : > { %1247 = vmatpush.msra.mxu2 %v1010_v8  ;;  %1172 = vmatpush.msra.mxu0 %v977_v9  ;;  %v1048_v57 = vld [vmem:[%s2231_s30 + $0x248] sm:$0xff]  ;;  %v1066_v60 = vld [vmem:[%s2231_s30 + $0x2d8] sm:$0xff]  ;;  %v1031_v61 = vld [vmem:[%s2231_s30 + $0x1c0] sm:$0xff]  ;;  %v920_v63 = vmax.f32 %v843_v54, 0.0  ;;  %v921_v0 = vmax.f32 %v844_v55, 0.0  ;;  %v922_v1 = vmax.f32 %v845_v59, 0.0 }
  0xdc   : > { %1695 = vmatpush.msra.mxu3 %v977_v9  ;;  %1210 = vmatpush.msra.mxu1 %v993_v10  ;;  %v1047_v62 = vld [vmem:[%s2231_s30 + $0x240] sm:$0xff]  ;;  %v1030_v2 = vld [vmem:[%s2231_s30 + $0x1b8] sm:$0xff]  ;;  %v1081_v4 = vld [vmem:[%s2231_s30 + $0x350] sm:$0xff] }
  0xdd   : > { %1248 = vmatpush.msra.mxu2 %v1009_v11  ;;  %1173 = vmatpush.msra.mxu0 %v976_v12  ;;  %v1046_v3 = vld [vmem:[%s2231_s30 + $0x238] sm:$0xff]  ;;  %v887_v5 = vld [vmem:[%s2762_s0 + $0x210] sm:$0x1]  ;;  %v1028_v9 = vld [vmem:[%s2231_s30 + $0x1a8] sm:$0xff] }
  0xde   : > { %1696 = vmatpush.msra.mxu3 %v976_v12  ;;  %1211 = vmatpush.msra.mxu1 %v992_v15  ;;  %v1029_v6 = vld [vmem:[%s2231_s30 + $0x1b0] sm:$0xff]  ;;  %v1080_v10 = vld [vmem:[%s2231_s30 + $0x348] sm:$0xff]  ;;  %v964_v12 = vmax.f32 %v887_v5, 0.0  ;;  %v1027_v17 = vld [vmem:[%s2231_s30 + $0x1a0] sm:$0xff] }
  0xdf   : > { %1249 = vmatpush.msra.mxu2 %v1008_v16  ;;  %1174 = vmatpush.msra.mxu0 %v975_v18  ;;  %v1045_v7 = vld [vmem:[%s2231_s30 + $0x230] sm:$0xff]  ;;  %v854_v13 = vld [vmem:[%s2762_s0 + $0x108] sm:$0xff]  ;;  %v856_v14 = vld [vmem:[%s2762_s0 + $0x118] sm:$0xff] }
  0xe0   : > { %1697 = vmatpush.msra.mxu3 %v975_v18  ;;  %1212 = vmatpush.msra.mxu1 %v991_v19  ;;  %v1065_v8 = vld [vmem:[%s2231_s30 + $0x2d0] sm:$0xff]  ;;  %v1064_v15 = vld [vmem:[%s2231_s30 + $0x2c8] sm:$0xff]  ;;  %v1079_v19 = vld [vmem:[%s2231_s30 + $0x340] sm:$0xff] }
  0xe1   : > { %1250 = vmatpush.msra.mxu2 %v1007_v20  ;;  %1175 = vmatmul.f32.vlgmr.msra.gmra.mxu0 %v898_v21  ;;  %v855_v11 = vld [vmem:[%s2762_s0 + $0x110] sm:$0xff]  ;;  %v1044_v16 = vld [vmem:[%s2231_s30 + $0x228] sm:$0xff]  ;;  %v931_v21 = vmax.f32 %v854_v13, 0.0  ;;  %v825_v36 = vld [vmem:[%s2762_s0 + $0x20] sm:$0xff] }
  0xe2   : > { %1213 = vmatmul.f32.vlgmr.msra.gmra.mxu1 %v899_v22  ;;  %1251 = vmatmul.f32.vlgmr.msra.gmra.mxu2 %v900_v23  ;;  %v932_v18 = vmax.f32 %v855_v11, 0.0  ;;  %v1043_v20 = vld [vmem:[%s2231_s30 + $0x220] sm:$0xff]  ;;  %v933_v22 = vmax.f32 %v856_v14, 0.0  ;;  %v1026_v23 = vld [vmem:[%s2231_s30 + $0x198] sm:$0xff]  ;;  %v1077_v33 = vld [vmem:[%s2231_s30 + $0x330] sm:$0xff] }
  0xe3   : > { %1273 = vmatpush.msrb.mxu3 %v1038_v24  ;;  %1387 = vmatpush.msrb.mxu2 %v1086_v25  ;;  %v1042_v24 = vld [vmem:[%s2231_s30 + $0x218] sm:$0xff]  ;;  %v1025_v25 = vld [vmem:[%s2231_s30 + $0x190] sm:$0xff]  ;;  %v1063_v27 = vld [vmem:[%s2231_s30 + $0x2c0] sm:$0xff] }
  0xe4   : > { %1311 = vmatpush.msrb.mxu0 %v1054_v26  ;;  %1349 = vmatpush.msrb.mxu1 %v1070_v30  ;;  %v1078_v26 = vld [vmem:[%s2231_s30 + $0x338] sm:$0xff]  ;;  %v867_v35 = vld [vmem:[%s2762_s0 + $0x170] sm:$0xff] }
  0xe5   : > { %1274 = vmatpush.msrb.mxu3 %v1037_v28  ;;  %1388 = vmatpush.msrb.mxu2 %v1085_v32  ;;  %v1041_v28 = vld [vmem:[%s2231_s30 + $0x210] sm:$0xff]  ;;  %v824_v30 = vld [vmem:[%s2762_s0 + $0x18] sm:$0xff]  ;;  %v1099_v5 = vld [vmem:[%s2231_s30 + $0x3e0] sm:$0xff] }
  0xe6   : > { %1312 = vmatpush.msrb.mxu0 %v1053_v29  ;;  %1350 = vmatpush.msrb.mxu1 %v1069_v37  ;;  %v1024_v29 = vld [vmem:[%s2231_s30 + $0x188] sm:$0xff]  ;;  %v1062_v32 = vld [vmem:[%s2231_s30 + $0x2b8] sm:$0xff]  ;;  %v1101_v55 = vld [vmem:[%s2231_s30 + $0x3f0] sm:$0xff] }
  0xe7   : > { %1275 = vmatpush.msrb.mxu3 %v1036_v31  ;;  %1389 = vmatpush.msrb.mxu2 %v1084_v40  ;;  %v866_v31 = vld [vmem:[%s2762_s0 + $0x168] sm:$0xff]  ;;  %v901_v40 = vmax.f32 %v824_v30, 0.0  ;;  %v836_v54 = vld [vmem:[%s2762_s0 + $0x78] sm:$0xff]  ;;  %v1055_v13 = vld [vmem:[%s2231_s30 + $0x280] sm:$0xff] }
  0xe8   : > { %1313 = vmatpush.msrb.mxu0 %v1052_v38  ;;  %1187 = vmatmul.f32.vlgmr.msra.gmra.mxu3 %v942_v34  ;;  %v1040_v34 = vld [vmem:[%s2231_s30 + $0x208] sm:$0xff]  ;;  %v1061_v38 = vld [vmem:[%s2231_s30 + $0x2b0] sm:$0xff]  ;;  %v1102_v49 = vld [vmem:[%s2231_s30 + $0x3f8] sm:$0xff] }
  0xe9   : > { %1276 = vmatpush.msrb.mxu3 %v1035_v39  ;;  %1178 = vmatmul.f32.gmra.mxu0 %v909_v43  ;;  %v1076_v37 = vld [vmem:[%s2231_s30 + $0x328] sm:$0xff]  ;;  %v1023_v39 = vld [vmem:[%s2231_s30 + $0x180] sm:$0xff]  ;;  %v944_v43 = vmax.f32 %v867_v35, 0.0  ;;  %v1098_v11 = vld [vmem:[%s2231_s30 + $0x3d8] sm:$0xff] }
  0xea   : > { %1314 = vmatpush.msrb.mxu0 %v1051_v42  ;;  %1216 = vmatmul.f32.gmra.mxu1 %v910_v41  ;;  %v1039_v41 = vld [vmem:[%s2231_s30 + $0x200] sm:$0xff]  ;;  %v943_v42 = vmax.f32 %v866_v31, 0.0  ;;  %v1114_v14 = vld [vmem:[%s2231_s30 + $0x458] sm:$0xff]  ;;  %v2465_v30 = vld [vmem:[%s2231_s30 + $0x4e8] sm:$0xff] }
  0xeb   : > { %1254 = vmatmul.f32.gmra.mxu2 %v911_v44  ;;  %1277 = vmatpush.msrb.mxu3 %v1034_v45  ;;  %v902_v44 = vmax.f32 %v825_v36, 0.0  ;;  %v835_v45 = vld [vmem:[%s2762_s0 + $0x70] sm:$0xff] }
  0xec   : > { %1315 = vmatpush.msrb.mxu0 %v1050_v46  ;;  %1351 = vmatpush.msrb.mxu1 %v1068_v47  ;;  %v1060_v46 = vld [vmem:[%s2231_s30 + $0x2a8] sm:$0xff]  ;;  %v1075_v47 = vld [vmem:[%s2231_s30 + $0x320] sm:$0xff]  ;;  %v912_v59 = vmax.f32 %v835_v45, 0.0  ;;  %v1109_v45 = vld [vmem:[%s2231_s30 + $0x430] sm:$0xff] }
  0xed   : > { %1390 = vmatpush.msrb.mxu2 %v1083_v48  ;;  %1278 = vmatpush.msrb.mxu3 %v1033_v50  ;;  %v877_v48 = vld [vmem:[%s2762_s0 + $0x1c0] sm:$0xff]  ;;  %v1118_v50 = vld [vmem:[%s2231_s30 + $0x478] sm:$0xff] }
  0xee   : > { %1316 = vmatpush.msrb.mxu0 %v1049_v51  ;;  %1352 = vmatpush.msrb.mxu1 %v1067_v53  ;;  %v878_v51 = vld [vmem:[%s2762_s0 + $0x1c8] sm:$0xff]  ;;  %v1059_v53 = vld [vmem:[%s2231_s30 + $0x2a0] sm:$0xff] }
  0xef   : > { %1391 = vmatpush.msrb.mxu2 %v1082_v52  ;;  %1279 = vmatpush.msrb.mxu3 %v1032_v56  ;;  %v1074_v52 = vld [vmem:[%s2231_s30 + $0x318] sm:$0xff]  ;;  %v1117_v56 = vld [vmem:[%s2231_s30 + $0x470] sm:$0xff]  ;;  %v2468_v31 = vld [vmem:[%s2231_s30 + $0x500] sm:$0xff] }
  0xf0   : > { %1317 = vmatpush.msrb.mxu0 %v1048_v57  ;;  %1190 = vmatmul.f32.gmra.mxu3 %v953_v58  ;;  %v1058_v57 = vld [vmem:[%s2231_s30 + $0x298] sm:$0xff]  ;;  %v1073_v58 = vld [vmem:[%s2231_s30 + $0x310] sm:$0xff]  ;;  %v2475_v36 = vld [vmem:[%s2231_s30 + $0x4e0] sm:$0xff] }
  0xf1   : > { %1353 = vmatpush.msrb.mxu1 %v1066_v60  ;;  %1280 = vmatpush.msrb.mxu3 %v1031_v61  ;;  %v954_v60 = vmax.f32 %v877_v48, 0.0  ;;  %v1100_v61 = vld [vmem:[%s2231_s30 + $0x3e8] sm:$0xff]  ;;  %v2499_v48 = vld [vmem:[%s2231_s30 + $0x4d0] sm:$0xff] }
  0xf2   : > { %1318 = vmatpush.msrb.mxu0 %v1047_v62  ;;  %1219 = vmatmul.f32.gmra.mxu1 %v921_v0  ;;  %v1116_v62 = vld [vmem:[%s2231_s30 + $0x468] sm:$0xff]  ;;  %v913_v0 = vmax.f32 %v836_v54, 0.0 }
  0xf3   : > { %1181 = vmatmul.f32.gmra.mxu0 %v920_v63  ;;  %1257 = vmatmul.f32.gmra.mxu2 %v922_v1  ;;  %v955_v63 = vmax.f32 %v878_v51, 0.0  ;;  %v846_v1 = vld [vmem:[%s2762_s0 + $0xc8] sm:$0xff] }
  0xf4   : > { %1281 = vmatpush.msrb.mxu3 %v1030_v2  ;;  %1319 = vmatpush.msrb.mxu0 %v1046_v3  ;;  %v1072_v2 = vld [vmem:[%s2231_s30 + $0x308] sm:$0xff]  ;;  %v1057_v3 = vld [vmem:[%s2231_s30 + $0x290] sm:$0xff] }
  0xf5   : > { %1392 = vmatpush.msrb.mxu2 %v1081_v4  ;;  %1354 = vmatpush.msrb.mxu1 %v1065_v8  ;;  %v888_v4 = vld [vmem:[%s2762_s0 + $0x218] sm:$0x1] }
  0xf6   : > { %1282 = vmatpush.msrb.mxu3 %v1029_v6  ;;  %1320 = vmatpush.msrb.mxu0 %v1045_v7  ;;  %v1115_v6 = vld [vmem:[%s2231_s30 + $0x460] sm:$0xff]  ;;  %v1056_v8 = vld [vmem:[%s2231_s30 + $0x288] sm:$0xff] }
  0xf7   : > { %1393 = vmatpush.msrb.mxu2 %v1080_v10  ;;  %1355 = vmatpush.msrb.mxu1 %v1064_v15  ;;  %v889_v7 = vld [vmem:[%s2762_s0 + $0x220] sm:$0x1]  ;;  %v847_v10 = vld [vmem:[%s2762_s0 + $0xd0] sm:$0xff]  ;;  %v923_v15 = vmax.f32 %v846_v1, 0.0  ;;  %v2529_v1 = vld [vmem:[%s2231_s30 + $0x4b8] sm:$0xff] }
  0xf8   : > { %1283 = vmatpush.msrb.mxu3 %v1028_v9  ;;  %1321 = vmatpush.msrb.mxu0 %v1044_v16  ;;  %v1071_v9 = vld [vmem:[%s2231_s30 + $0x300] sm:$0xff]  ;;  %v965_v16 = vmax.f32 %v888_v4, 0.0 }
  0xf9   : > { %1193 = vmatmul.f32.gmra.mxu3 %v964_v12  ;;  %1394 = vmatpush.msrb.mxu2 %v1079_v19  ;;  %v2435_v12 = vld [vmem:[%s2231_s30 + $0x508] sm:$0xff]  ;;  %v966_v19 = vmax.f32 %v889_v7, 0.0 }
  0xfa   : > { %1284 = vmatpush.msrb.mxu3 %v1027_v17  ;;  %1322 = vmatpush.msrb.mxu0 %v1043_v20  ;;  %v1097_v17 = vld [vmem:[%s2231_s30 + $0x3d0] sm:$0xff]  ;;  %v924_v20 = vmax.f32 %v847_v10, 0.0  ;;  %v1087_v10 = vld [vmem:[%s2231_s30 + $0x380] sm:$0xff] }
  0xfb   : > { %1222 = vmatmul.f32.gmra.mxu1 %v932_v18  ;;  %1184 = vmatmul.f32.gmra.mxu0 %v931_v21  ;;  %v2441_v18 = vld [vmem:[%s2231_s30 + $0x4f8] sm:$0xff]  ;;  %v1096_v21 = vld [vmem:[%s2231_s30 + $0x3c8] sm:$0xff] }
  0xfc   : > { %1260 = vmatmul.f32.gmra.mxu2 %v933_v22  ;;  %1285 = vmatpush.msrb.mxu3 %v1026_v23  ;;  %v1113_v22 = vld [vmem:[%s2231_s30 + $0x450] sm:$0xff] }
  0xfd   : > { %1323 = vmatpush.msrb.mxu0 %v1042_v24  ;;  %1395 = vmatpush.msrb.mxu2 %v1078_v26  ;;  %v857_v23 = vld [vmem:[%s2762_s0 + $0x120] sm:$0xff]  ;;  %v858_v24 = vld [vmem:[%s2762_s0 + $0x128] sm:$0xff] }
  0xfe   : > { %1356 = vmatpush.msrb.mxu1 %v1063_v27  ;;  %1286 = vmatpush.msrb.mxu3 %v1025_v25  ;;  %v2454_v25 = vld [vmem:[%s2231_s30 + $0x4f0] sm:$0xff]  ;;  %v826_v26 = vld [vmem:[%s2762_s0 + $0x28] sm:$0xff]  ;;  %v1095_v27 = vld [vmem:[%s2231_s30 + $0x3c0] sm:$0xff] }
  0xff   : > { %1324 = vmatpush.msrb.mxu0 %v1041_v28  ;;  %1396 = vmatpush.msrb.mxu2 %v1077_v33  ;;  %v1112_v28 = vld [vmem:[%s2231_s30 + $0x448] sm:$0xff]  ;;  %v1111_v33 = vld [vmem:[%s2231_s30 + $0x440] sm:$0xff]  ;;  %v903_v35 = vmax.f32 %v826_v26, 0.0 }
 0x100   : > { %1357 = vmatpush.msrb.mxu1 %v1062_v32  ;;  %1287 = vmatpush.msrb.mxu3 %v1024_v29  ;;  %v827_v29 = vld [vmem:[%s2762_s0 + $0x30] sm:$0xff]  ;;  %v1094_v32 = vld [vmem:[%s2231_s30 + $0x3b8] sm:$0xff] }
 0x101   : > { %1325 = vmatpush.msrb.mxu0 %v1040_v34  ;;  %1397 = vmatpush.msrb.mxu2 %v1076_v37  ;;  %v934_v34 = vmax.f32 %v857_v23, 0.0  ;;  %v935_v37 = vmax.f32 %v858_v24, 0.0  ;;  %v828_v26 = vld [vmem:[%s2762_s0 + $0x38] sm:$0xff] }
 0x102   : > { %1358 = vmatpush.msrb.mxu1 %v1061_v38  ;;  %1288 = vmatpush.msrb.mxu3 %v1023_v39  ;;  %v904_v38 = vmax.f32 %v827_v29, 0.0  ;;  %v1093_v39 = vld [vmem:[%s2231_s30 + $0x3b0] sm:$0xff]  ;;  %v2591_v29 = vld [vmem:[%s2231_s30 + $0x480] sm:$0xff] }
 0x103   : > { %1326 = vmatpush.msrb.mxu0 %v1039_v41  ;;  %1289 = vmatmul.f32.vlgmr.msrb.gmra.mxu3 %v901_v40  ;;  %v1110_v40 = vld [vmem:[%s2231_s30 + $0x438] sm:$0xff] }
 0x104   : > { %1225 = vmatmul.f32.gmra.mxu1 %v943_v42  ;;  %1263 = vmatmul.f32.gmra.mxu2 %v944_v43  ;;  %v868_v41 = vld [vmem:[%s2762_s0 + $0x178] sm:$0xff]  ;;  %v837_v43 = vld [vmem:[%s2762_s0 + $0x80] sm:$0xff] }
 0x105   : > { %1327 = vmatmul.f32.vlgmr.msrb.gmra.mxu0 %v902_v44  ;;  %1359 = vmatpush.msrb.mxu1 %v1060_v46  ;;  %v2485_v42 = vld [vmem:[%s2231_s30 + $0x4d8] sm:$0xff]  ;;  %v1092_v44 = vld [vmem:[%s2231_s30 + $0x3a8] sm:$0xff]  ;;  %v869_v46 = vld [vmem:[%s2762_s0 + $0x180] sm:$0xff]  ;;  %v945_v51 = vmax.f32 %v868_v41, 0.0 }
 0x106   : > { %1398 = vmatpush.msrb.mxu2 %v1075_v47  ;;  %1425 = vmatpush.msra.mxu3 %v1102_v49  ;;  %v838_v47 = vld [vmem:[%s2762_s0 + $0x88] sm:$0xff]  ;;  %v946_v54 = vmax.f32 %v869_v46, 0.0 }
 0x107   : > { %1463 = vmatpush.msra.mxu0 %v1118_v50  ;;  %1360 = vmatpush.msrb.mxu1 %v1059_v53  ;;  %v1108_v49 = vld [vmem:[%s2231_s30 + $0x428] sm:$0xff]  ;;  %v1091_v50 = vld [vmem:[%s2231_s30 + $0x3a0] sm:$0xff] }
 0x108   : > { %1399 = vmatpush.msrb.mxu2 %v1074_v52  ;;  %1426 = vmatpush.msra.mxu3 %v1101_v55  ;;  %v914_v52 = vmax.f32 %v837_v43, 0.0  ;;  %v2505_v53 = vld [vmem:[%s2231_s30 + $0x4c8] sm:$0xff]  ;;  %v915_v55 = vmax.f32 %v838_v47, 0.0 }
 0x109   : > { %1464 = vmatpush.msra.mxu0 %v1117_v56  ;;  %1361 = vmatpush.msrb.mxu1 %v1058_v57  ;;  %v1107_v56 = vld [vmem:[%s2231_s30 + $0x420] sm:$0xff]  ;;  %v1090_v57 = vld [vmem:[%s2231_s30 + $0x398] sm:$0xff] }
 0x10a   : > { %1400 = vmatpush.msrb.mxu2 %v1073_v58  ;;  %1427 = vmatpush.msra.mxu3 %v1100_v61  ;;  %v879_v58 = vld [vmem:[%s2762_s0 + $0x1d0] sm:$0xff]  ;;  %v1106_v61 = vld [vmem:[%s2231_s30 + $0x418] sm:$0xff] }
 0x10b   : > { %1465 = vmatpush.msra.mxu0 %v1116_v62  ;;  %1292 = vmatmul.f32.gmra.mxu3 %v912_v59  ;;  %v2515_v59 = vld [vmem:[%s2231_s30 + $0x4c0] sm:$0xff]  ;;  %v1089_v62 = vld [vmem:[%s2231_s30 + $0x390] sm:$0xff]  ;;  %v956_v4 = vmax.f32 %v879_v58, 0.0  ;;  %v892_v43 = vld [vmem:[%s2762_s0 + $0x238] sm:$0x1] }
 0x10c   : > { %1228 = vmatmul.f32.gmra.mxu1 %v954_v60  ;;  %1266 = vmatmul.f32.gmra.mxu2 %v955_v63  ;;  %v848_v60 = vld [vmem:[%s2762_s0 + $0xd8] sm:$0xff]  ;;  %v969_v47 = vmax.f32 %v892_v43, 0.0 }
 0x10d   : > { %1330 = vmatmul.f32.gmra.mxu0 %v913_v0  ;;  %1401 = vmatpush.msrb.mxu2 %v1072_v2  ;;  %v880_v63 = vld [vmem:[%s2762_s0 + $0x1d8] sm:$0xff]  ;;  %v849_v0 = vld [vmem:[%s2762_s0 + $0xe0] sm:$0xff] }
 0x10e   : > { %1362 = vmatpush.msrb.mxu1 %v1057_v3  ;;  %1428 = vmatpush.msra.mxu3 %v1099_v5  ;;  %v1105_v2 = vld [vmem:[%s2231_s30 + $0x410] sm:$0xff]  ;;  %v1088_v3 = vld [vmem:[%s2231_s30 + $0x388] sm:$0xff]  ;;  %v925_v5 = vmax.f32 %v848_v60, 0.0  ;;  %v957_v7 = vmax.f32 %v880_v63, 0.0 }
 0x10f   : > { %1466 = vmatpush.msra.mxu0 %v1115_v6  ;;  %1402 = vmatpush.msrb.mxu2 %v1071_v9  ;;  %v2535_v6 = vld [vmem:[%s2231_s30 + $0x4b0] sm:$0xff]  ;;  %v1104_v9 = vld [vmem:[%s2231_s30 + $0x408] sm:$0xff] }
 0x110   : > { %1363 = vmatpush.msrb.mxu1 %v1056_v8  ;;  %1429 = vmatpush.msra.mxu3 %v1098_v11  ;;  %v926_v8 = vmax.f32 %v849_v0, 0.0  ;;  %v2542_v11 = vld [vmem:[%s2231_s30 + $0x4a8] sm:$0xff]  ;;  %v873_v60 = vld [vmem:[%s2762_s0 + $0x1a0] sm:$0xff] }
 0x111   : > { %1553 = vmatpush.msra.mxu2 %v2435_v12  ;;  %1467 = vmatpush.msra.mxu0 %v1114_v14  ;;  %v859_v14 = vld [vmem:[%s2762_s0 + $0x130] sm:$0xff]  ;;  %v872_v58 = vld [vmem:[%s2762_s0 + $0x198] sm:$0xff]  ;;  %v950_v0 = vmax.f32 %v873_v60, 0.0 }
 0x112   : > { %1364 = vmatpush.msrb.mxu1 %v1055_v13  ;;  %1430 = vmatpush.msra.mxu3 %v1097_v17  ;;  %v890_v13 = vld [vmem:[%s2762_s0 + $0x228] sm:$0x1]  ;;  %v860_v17 = vld [vmem:[%s2762_s0 + $0x138] sm:$0xff] }
 0x113   : > { %1295 = vmatmul.f32.gmra.mxu3 %v923_v15  ;;  %1468 = vmatpush.msra.mxu0 %v1113_v22  ;;  %v1103_v15 = vld [vmem:[%s2231_s30 + $0x400] sm:$0xff]  ;;  %v2563_v22 = vld [vmem:[%s2231_s30 + $0x498] sm:$0xff]  ;;  %v937_v24 = vmax.f32 %v860_v17, 0.0 }
 0x114   : > { %1698 = vmatpush.msra.mxu1 %v2441_v18  ;;  %1269 = vmatmul.f32.gmra.mxu2 %v966_v19  ;;  %v2558_v19 = vld [vmem:[%s2231_s30 + $0x4a0] sm:$0xff] }
 0x115   : > { %1231 = vmatmul.f32.gmra.mxu1 %v965_v16  ;;  %1333 = vmatmul.f32.gmra.mxu0 %v924_v20  ;;  %v891_v16 = vld [vmem:[%s2762_s0 + $0x230] sm:$0x1]  ;;  %v967_v20 = vmax.f32 %v890_v13, 0.0 }
 0x116   : > { %1431 = vmatpush.msra.mxu3 %v1096_v21  ;;  %1699 = vmatpush.msra.mxu1 %v2454_v25  ;;  %v936_v21 = vmax.f32 %v859_v14, 0.0  ;;  %v968_v23 = vmax.f32 %v891_v16, 0.0  ;;  %v894_v14 = vld [vmem:[%s2762_s0 + $0x248] sm:$0x1]  ;;  %v895_v17 = vld [vmem:[%s2762_s0 + $0x250] sm:$0x1] }
 0x117   : > { %1554 = vmatpush.msra.mxu2 %v2468_v31  ;;  %1469 = vmatpush.msra.mxu0 %v1112_v28  ;;  %v829_v28 = vld [vmem:[%s2762_s0 + $0x40] sm:$0xff] }
 0x118   : > { %1432 = vmatpush.msra.mxu3 %v1095_v27  ;;  %1700 = vmatpush.msra.mxu1 %v2465_v30  ;;  %v2580_v27 = vld [vmem:[%s2231_s30 + $0x488] sm:$0xff] }
 0x119   : > { %1470 = vmatpush.msra.mxu0 %v1111_v33 }
 0x11a   : > { %1433 = vmatpush.msra.mxu3 %v1094_v32  ;;  %1701 = vmatpush.msra.mxu1 %v2475_v36 }
 0x11b   : > { %1298 = vmatmul.f32.gmra.mxu3 %v934_v34  ;;  %1471 = vmatpush.msra.mxu0 %v1110_v40  ;;  %v906_v34 = vmax.f32 %v829_v28, 0.0  ;;  %v897_v28 = vld [vmem:[%s2762_s0 + $0x260] sm:$0x1] }
 0x11c   : > { %1403 = vmatmul.f32.vlgmr.msrb.gmra.mxu2 %v904_v38  ;;  %1434 = vmatpush.msra.mxu3 %v1093_v39 }
 0x11d   : > { %1365 = vmatmul.f32.vlgmr.msrb.gmra.mxu1 %v903_v35  ;;  %1336 = vmatmul.f32.gmra.mxu0 %v935_v37  ;;  %v881_v35 = vld [vmem:[%s2762_s0 + $0x1e0] sm:$0xff]  ;;  %v840_v37 = vld [vmem:[%s2762_s0 + $0x98] sm:$0xff] }
 0x11e   : > { %1702 = vmatpush.msra.mxu1 %v2485_v42  ;;  %1435 = vmatpush.msra.mxu3 %v1092_v44  ;;  %v958_v39 = vmax.f32 %v881_v35, 0.0  ;;  %v917_v41 = vmax.f32 %v840_v37, 0.0  ;;  %v893_v44 = vld [vmem:[%s2762_s0 + $0x240] sm:$0x1] }
 0x11f   : > { %1472 = vmatpush.msra.mxu0 %v1109_v45  ;;  %v851_v45 = vld [vmem:[%s2762_s0 + $0xf0] sm:$0xff] }
 0x120   : > { %1703 = vmatpush.msra.mxu1 %v2499_v48  ;;  %1436 = vmatpush.msra.mxu3 %v1091_v50  ;;  %v861_v50 = vld [vmem:[%s2762_s0 + $0x140] sm:$0xff] }
 0x121   : > { %1473 = vmatpush.msra.mxu0 %v1108_v49  ;;  %v928_v49 = vmax.f32 %v851_v45, 0.0 }
 0x122   : > { %1704 = vmatpush.msra.mxu1 %v2505_v53  ;;  %1437 = vmatpush.msra.mxu3 %v1090_v57 }
 0x123   : > { %1301 = vmatmul.f32.gmra.mxu3 %v945_v51  ;;  %1474 = vmatpush.msra.mxu0 %v1107_v56  ;;  %v841_v51 = vld [vmem:[%s2762_s0 + $0xa0] sm:$0xff] }
 0x124   : > { %1406 = vmatmul.f32.gmra.mxu2 %v915_v55  ;;  %1705 = vmatpush.msra.mxu1 %v2515_v59  ;;  %v918_v55 = vmax.f32 %v841_v51, 0.0 }
 0x125   : > { %1368 = vmatmul.f32.gmra.mxu1 %v914_v52  ;;  %1339 = vmatmul.f32.gmra.mxu0 %v946_v54  ;;  %v862_v52 = vld [vmem:[%s2762_s0 + $0x148] sm:$0xff]  ;;  %v938_v54 = vmax.f32 %v861_v50, 0.0 }
 0x126   : > { %1475 = vmatpush.msra.mxu0 %v1106_v61  ;;  %1438 = vmatpush.msra.mxu3 %v1089_v62  ;;  %v939_v56 = vmax.f32 %v862_v52, 0.0  ;;  %v842_v61 = vld [vmem:[%s2762_s0 + $0xa8] sm:$0xff]  ;;  %v949_v62 = vmax.f32 %v872_v58, 0.0 }
 0x127   : > { %1706 = vmatpush.msra.mxu1 %v2529_v1 }
 0x128   : > { %1476 = vmatpush.msra.mxu0 %v1105_v2  ;;  %1439 = vmatpush.msra.mxu3 %v1088_v3  ;;  %v883_v2 = vld [vmem:[%s2762_s0 + $0x1f0] sm:$0xff] }
 0x129   : > { %1707 = vmatpush.msra.mxu1 %v2535_v6  ;;  %v863_v3 = vld [vmem:[%s2762_s0 + $0x150] sm:$0xff] }
 0x12a   : > { %1477 = vmatpush.msra.mxu0 %v1104_v9  ;;  %1440 = vmatpush.msra.mxu3 %v1087_v10  ;;  %v960_v9 = vmax.f32 %v883_v2, 0.0  ;;  %v940_v10 = vmax.f32 %v863_v3, 0.0 }
 0x12b   : > { %1304 = vmatmul.f32.gmra.mxu3 %v956_v4  ;;  %1708 = vmatpush.msra.mxu1 %v2542_v11  ;;  %v884_v4 = vld [vmem:[%s2762_s0 + $0x1f8] sm:$0xff] }
 0x12c   : > { %1409 = vmatmul.f32.gmra.mxu2 %v926_v8  ;;  %1714 = vmatpush.msrb.mxu3 %v2435_v12  ;;  %v2571_v12 = vld [vmem:[%s2231_s30 + $0x490] sm:$0xff] }
 0x12d   : > { %1371 = vmatmul.f32.gmra.mxu1 %v925_v5  ;;  %1342 = vmatmul.f32.gmra.mxu0 %v957_v7  ;;  %v853_v5 = vld [vmem:[%s2762_s0 + $0x100] sm:$0xff] }
 0x12e   : > { %1478 = vmatpush.msra.mxu0 %v1103_v15  ;;  %1709 = vmatpush.msra.mxu1 %v2558_v19  ;;  %v930_v13 = vmax.f32 %v853_v5, 0.0  ;;  %v874_v15 = vld [vmem:[%s2762_s0 + $0x1a8] sm:$0xff] }
 0x12f   : > { %1715 = vmatpush.msrb.mxu3 %v2468_v31  ;;  %v905_v31 = vmax.f32 %v828_v26, 0.0  ;;  %v972_v26 = vmax.f32 %v895_v17, 0.0 }
 0x130   : > { %1501 = vmatpush.msrb.mxu0 %v2441_v18  ;;  %1710 = vmatpush.msra.mxu1 %v2563_v22  ;;  %v870_v18 = vld [vmem:[%s2762_s0 + $0x188] sm:$0xff] }
 0x131   : > { %v947_v32 = vmax.f32 %v870_v18, 0.0 }
 0x132   : > { %1502 = vmatpush.msrb.mxu0 %v2454_v25  ;;  %v871_v25 = vld [vmem:[%s2762_s0 + $0x190] sm:$0xff]  ;;  %1711 = vmatpush.msra.mxu1 %v2571_v12 }
 0x133   : > { %1307 = vmatmul.f32.gmra.mxu3 %v967_v20  ;;  %v948_v33 = vmax.f32 %v871_v25, 0.0  ;;  %v885_v25 = vld [vmem:[%s2762_s0 + $0x200] sm:$0xff] }
 0x134   : > { %1412 = vmatmul.f32.gmra.mxu2 %v937_v24  ;;  %1503 = vmatpush.msrb.mxu0 %v2465_v30  ;;  %v839_v30 = vld [vmem:[%s2762_s0 + $0x90] sm:$0xff]  ;;  %v951_v24 = vmax.f32 %v874_v15, 0.0  ;;  %v962_v35 = vmax.f32 %v885_v25, 0.0 }
 0x135   : > { %1374 = vmatmul.f32.gmra.mxu1 %v936_v21  ;;  %1345 = vmatmul.f32.gmra.mxu0 %v968_v23  ;;  %v916_v38 = vmax.f32 %v839_v30, 0.0  ;;  %v971_v23 = vmax.f32 %v894_v14, 0.0 }
 0x136   : > { %1712 = vmatpush.msra.mxu1 %v2580_v27  ;;  %1504 = vmatpush.msrb.mxu0 %v2475_v36  ;;  %v882_v36 = vld [vmem:[%s2762_s0 + $0x1e8] sm:$0xff] }
 0x137   : > { %v959_v40 = vmax.f32 %v882_v36, 0.0  ;;  %v974_v36 = vmax.f32 %v897_v28, 0.0 }
 0x138   : > { %1713 = vmatpush.msra.mxu1 %v2591_v29  ;;  %1505 = vmatpush.msrb.mxu0 %v2485_v42  ;;  %v850_v42 = vld [vmem:[%s2762_s0 + $0xe8] sm:$0xff] }
 0x139   : > { %v927_v46 = vmax.f32 %v850_v42, 0.0  ;;  %v886_v42 = vld [vmem:[%s2762_s0 + $0x208] sm:$0xff] }
 0x13a   : > { %1506 = vmatpush.msrb.mxu0 %v2499_v48  ;;  %v970_v48 = vmax.f32 %v893_v44, 0.0 }
 0x13b   : > { %1441 = vmatmul.f32.vlgmr.msra.gmra.mxu3 %v905_v31  ;;  %v830_v31 = vld [vmem:[%s2762_s0 + $0x48] sm:$0xff] }
 0x13c   : > { %1415 = vmatmul.f32.gmra.mxu2 %v948_v33  ;;  %1507 = vmatpush.msrb.mxu0 %v2505_v53  ;;  %v831_v53 = vld [vmem:[%s2762_s0 + $0x50] sm:$0xff] }
 0x13d   : > { %1377 = vmatmul.f32.gmra.mxu1 %v947_v32  ;;  %1479 = vmatmul.f32.vlgmr.msra.gmra.mxu0 %v906_v34  ;;  %v908_v57 = vmax.f32 %v831_v53, 0.0  ;;  %v875_v32 = vld [vmem:[%s2762_s0 + $0x1b0] sm:$0xff] }
 0x13e   : > { %1508 = vmatpush.msrb.mxu0 %v2515_v59  ;;  %v852_v59 = vld [vmem:[%s2762_s0 + $0xf8] sm:$0xff] }
 0x13f   : > { %v929_v63 = vmax.f32 %v852_v59, 0.0 }
 0x140   : > { %1509 = vmatpush.msrb.mxu0 %v2529_v1  ;;  %v919_v1 = vmax.f32 %v842_v61, 0.0 }
 0x142   : > { %1510 = vmatpush.msrb.mxu0 %v2535_v6 }
 0x143   : > { %1444 = vmatmul.f32.gmra.mxu3 %v916_v38  ;;  %v907_v38 = vmax.f32 %v830_v31, 0.0 }
 0x144   : > { %1418 = vmatmul.f32.gmra.mxu2 %v959_v40  ;;  %1511 = vmatpush.msrb.mxu0 %v2542_v11  ;;  %v961_v11 = vmax.f32 %v884_v4, 0.0 }
 0x145   : > { %1380 = vmatmul.f32.gmra.mxu1 %v958_v39  ;;  %1482 = vmatmul.f32.gmra.mxu0 %v917_v41  ;;  %v952_v39 = vmax.f32 %v875_v32, 0.0  ;;  %v896_v41 = vld [vmem:[%s2762_s0 + $0x258] sm:$0x1] }
 0x146   : > { %1512 = vmatpush.msrb.mxu0 %v2558_v19  ;;  %v864_v19 = vld [vmem:[%s2762_s0 + $0x158] sm:$0xff] }
 0x147   : > { %v941_v18 = vmax.f32 %v864_v19, 0.0 }
 0x148   : > { %1513 = vmatpush.msrb.mxu0 %v2563_v22 }
 0x14a   : > { %1514 = vmatpush.msrb.mxu0 %v2571_v12 }
 0x14b   : > { %1447 = vmatmul.f32.gmra.mxu3 %v927_v46  ;;  %v973_v46 = vmax.f32 %v896_v41, 0.0 }
 0x14c   : > { %1421 = vmatmul.f32.gmra.mxu2 %v970_v48  ;;  %1515 = vmatpush.msrb.mxu0 %v2580_v27  ;;  %v963_v48 = vmax.f32 %v886_v42, 0.0 }
 0x14d   : > { %1383 = vmatmul.f32.gmra.mxu1 %v969_v47  ;;  %1485 = vmatmul.f32.gmra.mxu0 %v928_v49 }
 0x14e   : > { %1516 = vmatpush.msrb.mxu0 %v2591_v29 }
 0x153   : > { %1450 = vmatmul.f32.gmra.mxu3 %v938_v54 }
 0x154   : > { %1672 = vmatmul.msk.f32.vlgmr.msra.gmra.mxu2 %vm1137_vm0, %v908_v57 }
 0x155   : > { %1520 = vmatmul.f32.vlgmr.msra.gmra.mxu1 %v918_v55  ;;  %1488 = vmatmul.f32.gmra.mxu0 %v939_v56 }
 0x15b   : > { %1453 = vmatmul.f32.gmra.mxu3 %v949_v62 }
 0x15c   : > { %1673 = vmatmul.msk.f32.gmra.mxu2 %vm1137_vm0, %v919_v1 }
 0x15d   : > { %1523 = vmatmul.f32.gmra.mxu1 %v929_v63  ;;  %1491 = vmatmul.f32.gmra.mxu0 %v950_v0 }
 0x15e   : > { %v1176_v6 = vpop.f32.mrf.mxu0 }
 0x15f   : > { %v1214_v7 = vpop.f32.mrf.mxu1 }
 0x160   : > { %v1215_v8 = vadd.f32 %v1214_v7, %v1176_v6 }
 0x163   : > { %1456 = vmatmul.f32.gmra.mxu3 %v960_v9 }
 0x164   : > { %1674 = vmatmul.msk.f32.gmra.mxu2 %vm1137_vm0, %v930_v13 }
 0x165   : > { %1526 = vmatmul.f32.gmra.mxu1 %v940_v10  ;;  %1494 = vmatmul.f32.gmra.mxu0 %v961_v11  ;;  %v1252_v16 = vpop.f32.mrf.mxu2 }
 0x166   : > { %v1253_v20 = vadd.f32 %v1252_v16, %v1215_v8  ;;  %v1179_v22 = vpop.f32.mrf.mxu0 }
 0x167   : > { %v1217_v21 = vpop.f32.mrf.mxu1 }
 0x168   : > { %v1218_v12 = vadd.f32 %v1217_v21, %v1179_v22 }
 0x16b   : > { %v1188_v27 = vpop.f32.mrf.mxu3  ;;  %1459 = vmatmul.f32.gmra.mxu3 %v971_v23 }
 0x16c   : > { %1675 = vmatmul.msk.f32.gmra.mxu2 %vm1137_vm0, %v941_v18 }
 0x16d   : > { %1529 = vmatmul.f32.gmra.mxu1 %v951_v24  ;;  %1497 = vmatmul.f32.gmra.mxu0 %v972_v26 }
 0x16e   : > { %v1255_v29 = vpop.f32.mrf.mxu2 }
 0x16f   : > { %v1256_v33 = vadd.f32 %v1255_v29, %v1218_v12  ;;  %v1220_v30 = vpop.f32.mrf.mxu1 }
 0x170   : > { %v1182_v34 = vpop.f32.mrf.mxu0 }
 0x171   : > { %v1221_v37 = vadd.f32 %v1220_v30, %v1182_v34 }
 0x173   : > { %v1191_v40 = vpop.f32.mrf.mxu3  ;;  %1678 = vmatmul.msk.f32.vlgmr.msrb.gmra.mxu3 %vm1137_vm0, %v974_v36 }
 0x174   : > { %1676 = vmatmul.msk.f32.gmra.mxu2 %vm1137_vm0, %v952_v39 }
 0x175   : > { %1532 = vmatmul.f32.gmra.mxu1 %v962_v35  ;;  %1517 = vmatmul.f32.vlgmr.msrb.gmra.mxu0 %v907_v38 }
 0x176   : > { %v1258_v43 = vpop.f32.mrf.mxu2 }
 0x177   : > { %v1259_v44 = vadd.f32 %v1258_v43, %v1221_v37 }
 0x178   : > { %v1223_v45 = vpop.f32.mrf.mxu1  ;;  %v1185_v47 = vpop.f32.mrf.mxu0 }
 0x179   : > { %v1224_v49 = vadd.f32 %v1223_v45, %v1185_v47 }
 0x17c   : > { %1677 = vmatmul.msk.f32.gmra.mxu2 %vm1137_vm0, %v963_v48  ;;  %v1194_v50 = vpop.f32.mrf.mxu3 }
 0x17d   : > { %1535 = vmatmul.f32.gmra.mxu1 %v973_v46 }
 0x17f   : > { %v1261_v51 = vpop.f32.mrf.mxu2 }
 0x180   : > { %v1262_v52 = vadd.f32 %v1261_v51, %v1224_v49 }
 0x181   : > { %v1226_v53 = vpop.f32.mrf.mxu1 }
 0x182   : > { %v1227_v54 = vadd.f32 %v1226_v53, %v1188_v27  ;;  %v1328_v55 = vpop.f32.mrf.mxu0 }
 0x186   : > { %v1290_v56 = vpop.f32.mrf.mxu3 }
 0x187   : > { %v1291_v57 = vadd.f32 %v1290_v56, %v1253_v20  ;;  %v1264_v58 = vpop.f32.mrf.mxu2 }
 0x188   : > { %v1265_v59 = vadd.f32 %v1264_v58, %v1227_v54 }
 0x189   : > { %v1229_v60 = vpop.f32.mrf.mxu1  ;;  %v1329_v63 = vadd.f32 %v1328_v55, %v1291_v57 }
 0x18a   : > { %v1230_v61 = vadd.f32 %v1229_v60, %v1191_v40  ;;  %v1331_v62 = vpop.f32.mrf.mxu0 }
 0x18e   : > { %v1293_v0 = vpop.f32.mrf.mxu3 }
 0x18f   : > { %v1294_v1 = vadd.f32 %v1293_v0, %v1256_v33  ;;  %v1267_v2 = vpop.f32.mrf.mxu2 }
 0x190   : > { %v1268_v3 = vadd.f32 %v1267_v2, %v1230_v61 }
 0x191   : > { %v1332_v7 = vadd.f32 %v1331_v62, %v1294_v1 }
 0x192   : > { %v1232_v4 = vpop.f32.mrf.mxu1  ;;  %v1334_v6 = vpop.f32.mrf.mxu0 }
 0x193   : > { %v1233_v5 = vadd.f32 %v1232_v4, %v1194_v50 }
 0x196   : > { %v1296_v8 = vpop.f32.mrf.mxu3 }
 0x197   : > { %v1297_v9 = vadd.f32 %v1296_v8, %v1259_v44  ;;  %v1270_v10 = vpop.f32.mrf.mxu2 }
 0x198   : > { %v2705_v11 = vadd.f32 %v1270_v10, %v1233_v5 }
 0x199   : > { %v1335_v16 = vadd.f32 %v1334_v6, %v1297_v9 }
 0x19a   : > { %v1366_v13 = vpop.f32.mrf.mxu1  ;;  %v1337_v14 = vpop.f32.mrf.mxu0 }
 0x19b   : > { %v1367_v15 = vadd.f32 %v1366_v13, %v1329_v63 }
 0x19e   : > { %v1299_v17 = vpop.f32.mrf.mxu3 }
 0x19f   : > { %v1300_v19 = vadd.f32 %v1299_v17, %v1262_v52  ;;  %v1404_v20 = vpop.f32.mrf.mxu2 }
 0x1a0   : > { %v2707_v21 = vadd.f32 %v1404_v20, %v1367_v15 }
 0x1a1   : > { %v1338_v24 = vadd.f32 %v1337_v14, %v1300_v19 }
 0x1a2   : > { %v1369_v22 = vpop.f32.mrf.mxu1  ;;  %v1340_v23 = vpop.f32.mrf.mxu0 }
 0x1a3   : > { %v1370_v51 = vadd.f32 %v1369_v22, %v1332_v7 }
 0x1a6   : > { %v1302_v12 = vpop.f32.mrf.mxu3 }
 0x1a7   : > { %v1303_v26 = vadd.f32 %v1302_v12, %v1265_v59  ;;  %v1407_v18 = vpop.f32.mrf.mxu2 }
 0x1a8   : > { %v1408_v52 = vadd.f32 %v1407_v18, %v1370_v51 }
 0x1a9   : > { %v1341_v28 = vadd.f32 %v1340_v23, %v1303_v26 }
 0x1aa   : > { %v1372_v27 = vpop.f32.mrf.mxu1  ;;  %v1343_v25 = vpop.f32.mrf.mxu0 }
 0x1ab   : > { %v1373_v58 = vadd.f32 %v1372_v27, %v1335_v16 }
 0x1ae   : > { %v1305_v29 = vpop.f32.mrf.mxu3 }
 0x1af   : > { %v1306_v31 = vadd.f32 %v1305_v29, %v1268_v3  ;;  %v1410_v32 = vpop.f32.mrf.mxu2 }
 0x1b0   : > { %v1411_v60 = vadd.f32 %v1410_v32, %v1373_v58 }
 0x1b1   : > { %v2709_v30 = vadd.f32 %v1343_v25, %v1306_v31 }
 0x1b2   : > { %v1375_v33 = vpop.f32.mrf.mxu1  ;;  %v1346_v34 = vpop.f32.mrf.mxu0 }
 0x1b3   : > { %v1376_v4 = vadd.f32 %v1375_v33, %v1338_v24 }
 0x1b6   : > { %v1308_v35 = vpop.f32.mrf.mxu3 }
 0x1b7   : > { %v1413_v36 = vpop.f32.mrf.mxu2  ;;  %v1309_v15 = vadd.f32 %v1308_v35, %v2705_v11 }
 0x1b8   : > { %v1414_v6 = vadd.f32 %v1413_v36, %v1376_v4 }
 0x1b9   : > { %v1347_v22 = vadd.f32 %v1346_v34, %v1309_v15 }
 0x1ba   : > { %v1378_v37 = vpop.f32.mrf.mxu1  ;;  %v1480_v38 = vpop.f32.mrf.mxu0 }
 0x1bb   : > { %v1379_v17 = vadd.f32 %v1378_v37, %v1341_v28 }
 0x1be   : > { %v1442_v39 = vpop.f32.mrf.mxu3 }
 0x1bf   : > { %v1416_v40 = vpop.f32.mrf.mxu2  ;;  %v1443_v19 = vadd.f32 %v1442_v39, %v2707_v21 }
 0x1c0   : > { %v1417_v23 = vadd.f32 %v1416_v40, %v1379_v17 }
 0x1c1   : > { %v1481_v29 = vadd.f32 %v1480_v38, %v1443_v19 }
 0x1c2   : > { %v1381_v41 = vpop.f32.mrf.mxu1  ;;  %v1483_v42 = vpop.f32.mrf.mxu0 }
 0x1c3   : > { %v1382_v21 = vadd.f32 %v1381_v41, %v2709_v30 }
 0x1c6   : > { %v1445_v43 = vpop.f32.mrf.mxu3 }
 0x1c7   : > { %v1419_v44 = vpop.f32.mrf.mxu2  ;;  %v1446_v55 = vadd.f32 %v1445_v43, %v1408_v52 }
 0x1c8   : > { %v1420_v36 = vadd.f32 %v1419_v44, %v1382_v21 }
 0x1c9   : > { %v1484_v59 = vadd.f32 %v1483_v42, %v1446_v55 }
 0x1ca   : > { %v1384_v45 = vpop.f32.mrf.mxu1  ;;  %v1486_v46 = vpop.f32.mrf.mxu0 }
 0x1cb   : > { %v1385_v12 = vadd.f32 %v1384_v45, %v1347_v22 }
 0x1ce   : > { %v1448_v47 = vpop.f32.mrf.mxu3 }
 0x1cf   : > { %v1422_v48 = vpop.f32.mrf.mxu2  ;;  %v1449_v0 = vadd.f32 %v1448_v47, %v1411_v60 }
 0x1d0   : > { %v1423_v11 = vadd.f32 %v1422_v48, %v1385_v12 }
 0x1d1   : > { %v1487_v5 = vadd.f32 %v1486_v46, %v1449_v0 }
 0x1d2   : > { %v1521_v49 = vpop.f32.mrf.mxu1  ;;  %v1489_v50 = vpop.f32.mrf.mxu0 }
 0x1d3   : > { %v1522_v61 = vadd.f32 %v1521_v49, %v1484_v59 }
 0x1d6   : > { %v1451_v53 = vpop.f32.mrf.mxu3 }
 0x1d7   : > { %v1556_v54 = vpop.f32.mrf.mxu2  ;;  %v1452_v10 = vadd.f32 %v1451_v53, %v1414_v6 }
 0x1d9   : > { %v1490_v20 = vadd.f32 %v1489_v50, %v1452_v10 }
 0x1da   : > { %v1524_v56 = vpop.f32.mrf.mxu1  ;;  %v1492_v57 = vpop.f32.mrf.mxu0 }
 0x1db   : > { %v1525_v7 = vadd.f32 %v1524_v56, %v1487_v5 }
 0x1de   : > { %v1454_v62 = vpop.f32.mrf.mxu3 }
 0x1df   : > { %v1559_v63 = vpop.f32.mrf.mxu2  ;;  %v1455_v18 = vadd.f32 %v1454_v62, %v1417_v23 }
 0x1e0   : > { %v1560_v1 = vadd.f32 %v1559_v63, %v1522_v61 }
 0x1e1   : > { %v1493_v34 = vadd.f32 %v1492_v57, %v1455_v18 }
 0x1e2   : > { %v1527_v2 = vpop.f32.mrf.mxu1  ;;  %v1495_v3 = vpop.f32.mrf.mxu0  ;;  %1578 = vst [vmem:[%s2712_s27 + $0x8] sm:$0xff] %v1560_v1 }
 0x1e3   : > { %v1528_v24 = vadd.f32 %v1527_v2, %v1490_v20 }
 0x1e6   : > { %v1457_v8 = vpop.f32.mrf.mxu3 }
 0x1e7   : > { %v1562_v9 = vpop.f32.mrf.mxu2  ;;  %v1458_v40 = vadd.f32 %v1457_v8, %v1420_v36 }
 0x1e8   : > { %v1563_v13 = vadd.f32 %v1562_v9, %v1525_v7 }
 0x1e9   : > { %v1496_v41 = vadd.f32 %v1495_v3, %v1458_v40 }
 0x1ea   : > { %v1530_v14 = vpop.f32.mrf.mxu1  ;;  %v1498_v16 = vpop.f32.mrf.mxu0  ;;  %1579 = vst [vmem:[%s2712_s27 + $0x10] sm:$0xff] %v1563_v13 }
 0x1eb   : > { %v1531_v37 = vadd.f32 %v1530_v14, %v1493_v34 }
 0x1ee   : > { %v1460_v27 = vpop.f32.mrf.mxu3 }
 0x1ef   : > { %v1565_v26 = vpop.f32.mrf.mxu2  ;;  %v1461_v28 = vadd.f32 %v1460_v27, %v1423_v11 }
 0x1f0   : > { %v1566_v25 = vadd.f32 %v1565_v26, %v1528_v24 }
 0x1f1   : > { %v1499_v38 = vadd.f32 %v1498_v16, %v1461_v28 }
 0x1f2   : > { %v1533_v31 = vpop.f32.mrf.mxu1  ;;  %v1518_v32 = vpop.f32.mrf.mxu0  ;;  %1580 = vst [vmem:[%s2712_s27 + $0x18] sm:$0xff] %v1566_v25 }
 0x1f3   : > { %v1519_v33 = vadd.f32 %v1518_v32, %v1481_v29  ;;  %v1534_v44 = vadd.f32 %v1533_v31, %v1496_v41 }
 0x1f5   : > { %v1557_v35 = vadd.f32 %v1556_v54, %v1519_v33 }
 0x1f6   : > { %v1574_v45 = vpop.f32.mrf.mxu3 }
 0x1f7   : > { %1577 = vst [vmem:[%s2712_s27] sm:$0xff] %v1557_v35  ;;  %v1568_v39 = vpop.f32.mrf.mxu2 }
 0x1f8   : > { %v1569_v42 = vadd.f32 %v1568_v39, %v1531_v37 }
 0x1fa   : > { %v1536_v43 = vpop.f32.mrf.mxu1  ;;  %1581 = vst [vmem:[%s2712_s27 + $0x20] sm:$0xff] %v1569_v42 }
 0x1fb   : > { %v1537_v46 = vadd.f32 %v1536_v43, %v1499_v38 }
 0x1fd   : > { %v1575_v30 = vadd.f32 %v1574_v45, %v1537_v46 }
 0x1ff   : > { %1583 = vst [vmem:[%s2712_s27 + $0x30] sm:$0x1] %v1575_v30  ;;  %v1571_v47 = vpop.f32.mrf.mxu2 }
 0x200   : > { %v1572_v48 = vadd.f32 %v1571_v47, %v1534_v44 }
 0x202   : > { %1582 = vst [vmem:[%s2712_s27 + $0x28] sm:$0xff] %v1572_v48 }
 0x203   : > { %1788 = shalt.err (!%p1785_p5)
}
 0x204   : > { %s1825_s28 = smov 128   ;;  %s1826_s23 = smov 256  }
 0x205   : > { %s1827_s24 = smov 8  }
 0x206   : > { %1719 = dma.vmem_to_hbm [thread:$0]  (%p1881_p6), %s1597_s6, 896, %s1599_s7, %s1585_s13, %s1825_s28, %s1826_s23, %s1827_s24  }
 0x207 PF: > { %s1613_s25 = sand.u32 1, %s1811_s9   ;;  %p1722_p7 = pnand %p1669_p9, %p1885_p8 }
 0x208   : > { %s1614_s26 = scalar_lea.sflag [#allocation4], %s1613_s25 }
 0x209   : > { %p1723_p10 = pneg %p1722_p7 }
 0x20b   : > { %1806 = dma.done.wait (%p1723_p10), %s1614_s26, 896  }
 0x20c   : > { %1808 = vsyncadd (%p1723_p10), %s1614_s26, 4294966400  ;;  %p12_p11 = scmp.ge.s32.totalorder %s1866_s15, 4   ;;  %s2767_s9 = smov %s1815_s10 }
 0x20d   : > { %s2768_s10 = smov %s1819_s11  ;;  %s2769_s11 = smov %s1879_s18 }
 0x20e   : > { %s2770_s12 = smov %s1866_s15  ;;  %14 = sbr.rel (!%p12_p11) target bundleno = 3 (0x3), region = 106 }
 0x213   :  { %1620 = vsyncpa [#allocation4], 1 }
 0x214   :  { %1622 = vsyncpa [#allocation4 + $0x1], 1 }

</bundles_post_ra>
